<compile_context>
chip_gen: v6e
topology: v6e:2x2x1
jax: 0.10.0
libtpu: 0.0.40
codegen_flags: <defaults>
</compile_context>

<pallas_src>
import functools
import math

import jax
import jax.numpy as jnp
from jax.experimental import pallas as pl
from jax.experimental.pallas import tpu as pltpu


# ---------------------------------------------------------------------------
# Kernel
# ---------------------------------------------------------------------------

def _layernorm(x, gamma, beta, eps):
    mu = jnp.mean(x, axis=-1, keepdims=True)
    xc = x - mu
    var = jnp.mean(xc * xc, axis=-1, keepdims=True)
    return xc * jax.lax.rsqrt(var + eps) * gamma + beta


def _encoder_kernel(x_ref, m_ref, pe_ref, ew_ref, eb_ref,
                    wqkv_ref, wo_ref, bo_ref, g1_ref, b1_ref,
                    wf1_ref, bf1_ref, wf2_ref, bf2_ref, g2_ref, b2_ref,
                    fcw_ref, fcb_ref, o_ref,
                    act_ref, ctx_ref,
                    *, n_batch, seq, n_heads, head_dim, eps, pe_scale):
    """Grid = (batch_blocks, num_layers).  One step = one TransformerBlock on a
    (n_batch*seq, E) row slab.  Layer 0 also runs the embedding (+PE); the last
    layer also runs the final fc + input residual."""
    l = pl.program_id(1)
    e = n_heads * head_dim
    bf16 = jnp.bfloat16

    # ---- embedding (+ optional positional encoding), layer 0 only -----------
    @pl.when(l == 0)
    def _():
        xm = (x_ref[...] * m_ref[...]).astype(bf16)                       # (R, V)
        h = jnp.dot(xm, ew_ref[...], preferred_element_type=jnp.float32)
        h = jnp.maximum(h + eb_ref[...], 0.0)                             # (R, E)
        # pe_scale == 1.0 and pe table == 0 when positional encoding is off.
        act_ref[...] = h * pe_scale + pe_ref[...]

    # ---- transformer block `l` ----------------------------------------------
    act = act_ref[...]                                                    # (R, E) f32

    # Fused QKV: one lane-dense (R,E)@(E,3E) matmul.  1/sqrt(d) is folded into
    # the Wq block-diagonal at pack time.
    qkv = jnp.dot(act.astype(bf16), wqkv_ref[...],
                  preferred_element_type=jnp.float32)                     # (R, 3E)

    for h_ in range(n_heads):
        lo = h_ * head_dim
        q_h = qkv[:, lo:lo + head_dim].reshape(n_batch, seq, head_dim)
        k_h = qkv[:, e + lo:e + lo + head_dim].reshape(n_batch, seq, head_dim)
        v_h = qkv[:, 2 * e + lo:2 * e + lo + head_dim].reshape(n_batch, seq, head_dim)
        s = jnp.einsum('bqd,bkd->bqk', q_h, k_h,
                       preferred_element_type=jnp.float32)                # (B, S, S)
        s = s - jnp.max(s, axis=-1, keepdims=True)
        p = jnp.exp(s)
        p = p * pl.reciprocal(jnp.sum(p, axis=-1, keepdims=True), approx=True)
        c = jnp.einsum('bqk,bkd->bqd', p, v_h,
                       preferred_element_type=jnp.float32)                # (B, S, d)
        # Assemble ctx for all heads at static lane offsets of a VMEM scratch.
        ctx_ref[:, lo:lo + head_dim] = c.reshape(n_batch * seq, head_dim)

    # Single (R,E)@(E,E) out-projection over all heads.
    attn = jnp.dot(ctx_ref[...].astype(bf16), wo_ref[...],
                   preferred_element_type=jnp.float32) + bo_ref[...]
    n1 = _layernorm(attn + act, g1_ref[...], b1_ref[...], eps)

    f = jnp.dot(n1.astype(bf16), wf1_ref[...],
                preferred_element_type=jnp.float32) + bf1_ref[...]
    f = f * jax.nn.sigmoid(f)                                             # SiLU
    f = jnp.dot(f.astype(bf16), wf2_ref[...],
                preferred_element_type=jnp.float32) + bf2_ref[...]
    n2 = _layernorm(f + n1, g2_ref[...], b2_ref[...], eps)
    act_ref[...] = n2

    # ---- final fc + input residual, last layer only --------------------------
    @pl.when(l == pl.num_programs(1) - 1)
    def _():
        y = jnp.dot(n2.astype(bf16), fcw_ref[...],
                    preferred_element_type=jnp.float32)
        o_ref[...] = y + fcb_ref[...] + x_ref[...]


# ---------------------------------------------------------------------------
# pallas_call wrapper
# ---------------------------------------------------------------------------

def _pick_batch_block(batch, seq, max_rows=512):
    """Pick batch elements per grid step: keep >=2 parallel steps when possible
    (both v7x TensorCores), otherwise maximize rows per step (<= max_rows)."""
    divisors = [d for d in range(1, batch + 1)
                if batch % d == 0 and d * seq <= max_rows]
    if not divisors:
        return 1
    multi = [d for d in divisors if batch // d >= 2]
    return max(multi) if multi else max(divisors)


def get_visibility_mask(visible_state):
    # visible (==1) -> 1.0, occluded (==0) -> 0.01 (host numpy in PyTorch; jnp here)
    is_visible = (visible_state == 1).astype(jnp.float32)
    is_occluded = (visible_state == 0).astype(jnp.float32)
    return is_visible + is_occluded * 0.01


def _positional_encoding_table(seq_len, embed_dim):
    # Matches the PyTorch module's (non-standard) formula exactly:
    #   col c even: sin(pos / 10000^(2c/E));  col c odd: cos(pos / 10000^(2c/E)).
    pos = jnp.arange(seq_len, dtype=jnp.float32)[:, None]
    col = jnp.arange(embed_dim, dtype=jnp.float32)[None, :]
    ang = pos / jnp.power(10000.0, 2.0 * col / embed_dim)
    even = (jnp.arange(embed_dim)[None, :] % 2) == 0
    return jnp.where(even, jnp.sin(ang), jnp.cos(ang))


def transformer_encoder_forward(x, visibility_state, occlusion_mask_strategy, packed,
                                *, n_heads=8, pe=False):
    b, s = x.shape[0], x.shape[1]
    v = 1
    for dd in x.shape[2:]:
        v *= dd
    e = packed["embed_w"].shape[1]
    ff = packed["ff_w1"].shape[2]
    num_layers = packed["w_qkv"].shape[0]
    head_input = packed["fc_w"].shape[1]
    if head_input != v:
        raise ValueError(
            f"fc output dim ({head_input}) must equal flattened input dim ({v}) "
            "for the `fc(out) + x` residual (cfg.MODEL.HEAD_INPUT == vocab_size).")
    d = e // n_heads

    x_flat = x.reshape(b * s, v).astype(jnp.float32)
    if occlusion_mask_strategy:
        mask = get_visibility_mask(visibility_state)
    else:
        mask = jnp.ones((b, s), jnp.float32)
    mask_flat = mask.reshape(b * s, 1).astype(jnp.float32)

    b_blk = _pick_batch_block(b, s)
    nb = b // b_blk
    rows = b_blk * s

    if pe:
        pe_tiled = jnp.tile(_positional_encoding_table(s, e), (b_blk, 1))
        pe_scale = math.sqrt(e)
    else:
        pe_tiled = jnp.zeros((rows, e), jnp.float32)
        pe_scale = 1.0

    kernel = functools.partial(
        _encoder_kernel, n_batch=b_blk, seq=s, n_heads=n_heads, head_dim=d,
        eps=1e-5, pe_scale=pe_scale)

    def row_spec(last):
        return pl.BlockSpec((rows, last), lambda i, l: (i, 0))

    def const2(shape):
        return pl.BlockSpec(shape, lambda i, l: (0, 0))

    def lw3(s1, s2):  # per-layer stacked weight: leading L dim squeezed out
        return pl.BlockSpec((None, s1, s2), lambda i, l: (l, 0, 0))

    out = pl.pallas_call(
        kernel,
        out_shape=jax.ShapeDtypeStruct((b * s, v), jnp.float32),
        grid=(nb, num_layers),
        in_specs=[
            row_spec(v),                      # x (flattened rows)
            row_spec(1),                      # visibility mask
            const2((rows, e)),                # positional-encoding tile
            const2((v, e)), const2((1, e)),   # embedding Linear
            lw3(e, 3 * e),                    # fused block-diagonal QKV
            lw3(e, e), lw3(1, e),             # out-proj W, b
            lw3(1, e), lw3(1, e),             # LayerNorm1 gamma / beta
            lw3(e, ff), lw3(1, ff),           # FFN Linear 1
            lw3(ff, e), lw3(1, e),            # FFN Linear 2
            lw3(1, e), lw3(1, e),             # LayerNorm2 gamma / beta
            const2((e, v)), const2((1, v)),   # final fc
        ],
        out_specs=pl.BlockSpec((rows, v), lambda i, l: (i, 0)),
        scratch_shapes=[pltpu.VMEM((rows, e), jnp.float32),   # activation carry
                        pltpu.VMEM((rows, e), jnp.float32)],  # per-head ctx slab
        compiler_params=pltpu.CompilerParams(
            dimension_semantics=("parallel", "arbitrary")),
    )(x_flat, mask_flat, pe_tiled,
      packed["embed_w"], packed["embed_b"],
      packed["w_qkv"], packed["wo"], packed["bo"],
      packed["ln1_g"], packed["ln1_b"],
      packed["ff_w1"], packed["ff_b1"], packed["ff_w2"], packed["ff_b2"],
      packed["ln2_g"], packed["ln2_b"],
      packed["fc_w"], packed["fc_b"])
    return out.reshape(b, s, v)


# ---------------------------------------------------------------------------
# Parameter init (PyTorch-default distributions) and one-time packing
# ---------------------------------------------------------------------------

def init_params(key, *, vocab_size, embed_dim, head_input, n_heads, num_layers,
                expansion_factor):
    d = embed_dim // n_heads
    f = expansion_factor * embed_dim
    keys = jax.random.split(key, 2 + num_layers)

    def linear(k, fan_in, w_shape, b_shape):
        kw, kb = jax.random.split(k)
        bound = 1.0 / math.sqrt(fan_in)
        w = jax.random.uniform(kw, w_shape, jnp.float32, -bound, bound)
        b = jax.random.uniform(kb, b_shape, jnp.float32, -bound, bound)
        return w, b

    embed_w, embed_b = linear(keys[0], vocab_size, (vocab_size, embed_dim), (1, embed_dim))
    fc_w, fc_b = linear(keys[1], embed_dim, (embed_dim, head_input), (1, head_input))

    layers = []
    for li in range(num_layers):
        lk = jax.random.split(keys[2 + li], 6)
        xb = math.sqrt(6.0 / (d + d))            # xavier_uniform_ on (d, d)
        wq = jax.random.uniform(lk[0], (d, d), jnp.float32, -xb, xb)
        wk = jax.random.uniform(lk[1], (d, d), jnp.float32, -xb, xb)
        wv = jax.random.uniform(lk[2], (d, d), jnp.float32, -xb, xb)
        wo, bo = linear(lk[3], embed_dim, (embed_dim, embed_dim), (1, embed_dim))
        ff_w1, ff_b1 = linear(lk[4], embed_dim, (embed_dim, f), (1, f))
        ff_w2, ff_b2 = linear(lk[5], f, (f, embed_dim), (1, embed_dim))
        layers.append(dict(
            wq=wq, wk=wk, wv=wv, wo=wo, bo=bo,
            ln1_g=jnp.ones((1, embed_dim), jnp.float32),
            ln1_b=jnp.zeros((1, embed_dim), jnp.float32),
            ff_w1=ff_w1, ff_b1=ff_b1, ff_w2=ff_w2, ff_b2=ff_b2,
            ln2_g=jnp.ones((1, embed_dim), jnp.float32),
            ln2_b=jnp.zeros((1, embed_dim), jnp.float32)))
    return dict(embed_w=embed_w, embed_b=embed_b, layers=layers, fc_w=fc_w, fc_b=fc_b)


def pack_params(params, n_heads):
    """One-time weight repacking for the fused kernel: block-diagonal fused QKV
    (scale folded into Wq), per-layer stacking with a leading L dim, bf16 matmul
    weights (biases / LN params stay f32)."""
    d = params["layers"][0]["wq"].shape[0]
    eye = jnp.eye(n_heads, dtype=jnp.float32)
    scale = 1.0 / math.sqrt(d)

    def bdiag(w):                       # (d,d) -> (E,E), same block on the diagonal
        return jnp.kron(eye, w)

    def stk(name):
        return jnp.stack([lp[name] for lp in params["layers"]])

    w_qkv = jnp.stack([
        jnp.concatenate([bdiag(lp["wq"] * scale), bdiag(lp["wk"]), bdiag(lp["wv"])],
                        axis=1)
        for lp in params["layers"]]).astype(jnp.bfloat16)        # (L, E, 3E)

    return dict(
        embed_w=params["embed_w"].astype(jnp.bfloat16), embed_b=params["embed_b"],
        w_qkv=w_qkv,
        wo=stk("wo").astype(jnp.bfloat16), bo=stk("bo"),
        ln1_g=stk("ln1_g"), ln1_b=stk("ln1_b"),
        ff_w1=stk("ff_w1").astype(jnp.bfloat16), ff_b1=stk("ff_b1"),
        ff_w2=stk("ff_w2").astype(jnp.bfloat16), ff_b2=stk("ff_b2"),
        ln2_g=stk("ln2_g"), ln2_b=stk("ln2_b"),
        fc_w=params["fc_w"].astype(jnp.bfloat16), fc_b=params["fc_b"])


# ---------------------------------------------------------------------------
# Pure-JAX reference (same mixed bf16/f32 precision as the kernel)
# ---------------------------------------------------------------------------

def _mm(a, b):
    return jnp.dot(a.astype(jnp.bfloat16), b.astype(jnp.bfloat16),
                   preferred_element_type=jnp.float32)


def _ln_ref(x, gamma, beta, eps=1e-5):
    mu = jnp.mean(x, axis=-1, keepdims=True)
    var = jnp.mean((x - mu) ** 2, axis=-1, keepdims=True)
    return (x - mu) / jnp.sqrt(var + eps) * gamma + beta


def _reference(x, visibility_state, occlusion_mask_strategy, params, *, n_heads, pe=False):
    b, s = x.shape[0], x.shape[1]
    xf = x.reshape(b, s, -1).astype(jnp.float32)
    if occlusion_mask_strategy:
        xin = xf * get_visibility_mask(visibility_state)[:, :, None]
    else:
        xin = xf
    h = jnp.maximum(_mm(xin, params["embed_w"]) + params["embed_b"][0], 0.0)
    e = h.shape[-1]
    if pe:
        h = h * math.sqrt(e) + _positional_encoding_table(s, e)[None]
    d = e // n_heads
    for lp in params["layers"]:
        xh = h.reshape(b, s, n_heads, d)
        q = _mm(xh, lp["wq"]).transpose(0, 2, 1, 3)
        k = _mm(xh, lp["wk"]).transpose(0, 2, 1, 3)
        v = _mm(xh, lp["wv"]).transpose(0, 2, 1, 3)
        sc = jnp.einsum('bhqd,bhkd->bhqk', q, k,
                        preferred_element_type=jnp.float32) / math.sqrt(d)
        p = jax.nn.softmax(sc, axis=-1)
        ctx = jnp.einsum('bhqk,bhkd->bhqd', p, v,
                         preferred_element_type=jnp.float32)
        ctx = ctx.transpose(0, 2, 1, 3).reshape(b, s, e)
        attn = _mm(ctx, lp["wo"]) + lp["bo"][0]
        n1 = _ln_ref(attn + h, lp["ln1_g"][0], lp["ln1_b"][0])
        f = _mm(n1, lp["ff_w1"]) + lp["ff_b1"][0]
        f = f * jax.nn.sigmoid(f)
        f = _mm(f, lp["ff_w2"]) + lp["ff_b2"][0]
        h = _ln_ref(f + n1, lp["ln2_g"][0], lp["ln2_b"][0])
    return _mm(h, params["fc_w"]) + params["fc_b"][0] + xf


# ---------------------------------------------------------------------------
# Demo / self-test
# ---------------------------------------------------------------------------

if __name__ == "__main__":
    key = jax.random.PRNGKey(0)
    kx, kvis, kp = jax.random.split(key, 3)

    # Small shapes consistent with the module.
    B, S = 2, 16               # batch, sequence length (e.g. joints/patches)
    C, W = 4, 32               # per-position feature dims; flattened vocab_size
    vocab_size = C * W         # 128
    embed_dim = 128
    n_heads = 8
    num_layers = 2
    expansion_factor = 1
    head_input = vocab_size    # cfg.MODEL.HEAD_INPUT must equal V for `fc(out) + x`

    x = jax.random.normal(kx, (B, S, C, W), dtype=jnp.float32)
    visibility_state = jax.random.randint(kvis, (B, S), 0, 2)  # 0=occluded, 1=visible

    params = init_params(kp, vocab_size=vocab_size, embed_dim=embed_dim,
                         head_input=head_input, n_heads=n_heads,
                         num_layers=num_layers, expansion_factor=expansion_factor)
    packed = pack_params(params, n_heads)        # one-time repack (not per forward)

    out = transformer_encoder_forward(x, visibility_state, True, packed,
                                      n_heads=n_heads, pe=False)
    out = jax.block_until_ready(out)

    ref = jax.block_until_ready(
        _reference(x, visibility_state, True, params, n_heads=n_heads, pe=False))

    assert out.shape == (B, S, head_input), out.shape
    max_err = float(jnp.max(jnp.abs(out - ref)))
    assert jnp.allclose(out, ref, atol=2e-2, rtol=2e-2), max_err
    print("KERNEL_OK")
</pallas_src>

<mosaic_0001>
module attributes {stable_mosaic.version = 11 : i64} {
  func.func @_encoder_kernel(%arg0: i32, %arg1: i32, %arg2: memref<16x128xf32, #tpu.memory_space<vmem>>, %arg3: memref<16x1xf32, #tpu.memory_space<vmem>>, %arg4: memref<16x128xf32, #tpu.memory_space<vmem>>, %arg5: memref<128x128xbf16, #tpu.memory_space<vmem>>, %arg6: memref<1x128xf32, #tpu.memory_space<vmem>>, %arg7: memref<1x128x384xbf16, #tpu.memory_space<vmem>>, %arg8: memref<1x128x128xbf16, #tpu.memory_space<vmem>>, %arg9: memref<1x1x128xf32, #tpu.memory_space<vmem>>, %arg10: memref<1x1x128xf32, #tpu.memory_space<vmem>>, %arg11: memref<1x1x128xf32, #tpu.memory_space<vmem>>, %arg12: memref<1x128x128xbf16, #tpu.memory_space<vmem>>, %arg13: memref<1x1x128xf32, #tpu.memory_space<vmem>>, %arg14: memref<1x128x128xbf16, #tpu.memory_space<vmem>>, %arg15: memref<1x1x128xf32, #tpu.memory_space<vmem>>, %arg16: memref<1x1x128xf32, #tpu.memory_space<vmem>>, %arg17: memref<1x1x128xf32, #tpu.memory_space<vmem>>, %arg18: memref<128x128xbf16, #tpu.memory_space<vmem>>, %arg19: memref<1x128xf32, #tpu.memory_space<vmem>>, %arg20: memref<16x128xf32, #tpu.memory_space<vmem>>, %arg21: memref<16x128xf32, #tpu.memory_space<vmem>>, %arg22: memref<16x128xf32, #tpu.memory_space<vmem>>) attributes {dimension_semantics = [#tpu.dimension_semantics<parallel>, #tpu.dimension_semantics<arbitrary>], iteration_bounds = array<i64: 2, 2>, scalar_prefetch = 0 : i64, scratch_operands = 2 : i64, tpu.core_type = #tpu.core_type<tc>, window_params = [{transform_indices = @transform_0, window_bounds = array<i64: 16, 128>}, {transform_indices = @transform_1, window_bounds = array<i64: 16, 1>}, {pipeline_mode = #tpu.pipeline_mode<synchronous>, transform_indices = @transform_2, window_bounds = array<i64: 16, 128>}, {pipeline_mode = #tpu.pipeline_mode<synchronous>, transform_indices = @transform_3, window_bounds = array<i64: 128, 128>}, {pipeline_mode = #tpu.pipeline_mode<synchronous>, transform_indices = @transform_4, window_bounds = array<i64: 1, 128>}, {transform_indices = @transform_5, window_bounds = array<i64: 1, 128, 384>}, {transform_indices = @transform_6, window_bounds = array<i64: 1, 128, 128>}, {transform_indices = @transform_7, window_bounds = array<i64: 1, 1, 128>}, {transform_indices = @transform_8, window_bounds = array<i64: 1, 1, 128>}, {transform_indices = @transform_9, window_bounds = array<i64: 1, 1, 128>}, {transform_indices = @transform_10, window_bounds = array<i64: 1, 128, 128>}, {transform_indices = @transform_11, window_bounds = array<i64: 1, 1, 128>}, {transform_indices = @transform_12, window_bounds = array<i64: 1, 128, 128>}, {transform_indices = @transform_13, window_bounds = array<i64: 1, 1, 128>}, {transform_indices = @transform_14, window_bounds = array<i64: 1, 1, 128>}, {transform_indices = @transform_15, window_bounds = array<i64: 1, 1, 128>}, {pipeline_mode = #tpu.pipeline_mode<synchronous>, transform_indices = @transform_16, window_bounds = array<i64: 128, 128>}, {pipeline_mode = #tpu.pipeline_mode<synchronous>, transform_indices = @transform_17, window_bounds = array<i64: 1, 128>}, {transform_indices = @transform_18, window_bounds = array<i64: 16, 128>}]} {
    %c0_i32 = arith.constant 0 : i32
    %0 = arith.cmpi eq, %arg1, %c0_i32 : i32
    %1 = arith.extui %0 : i1 to i32
    %c0_i32_0 = arith.constant 0 : i32
    %2 = arith.cmpi ne, %1, %c0_i32_0 : i32
    scf.if %2 {
      %c0_95 = arith.constant 0 : index
      %c0_96 = arith.constant 0 : index
      %253 = vector.load %arg2[%c0_95, %c0_96] : memref<16x128xf32, #tpu.memory_space<vmem>>, vector<16x128xf32>
      %c0_97 = arith.constant 0 : index
      %c0_98 = arith.constant 0 : index
      %254 = vector.load %arg3[%c0_97, %c0_98] : memref<16x1xf32, #tpu.memory_space<vmem>>, vector<16x1xf32>
      %255 = vector.broadcast %254 : vector<16x1xf32> to vector<16x128xf32>
      %256 = arith.mulf %253, %255 : vector<16x128xf32>
      %257 = arith.truncf %256 : vector<16x128xf32> to vector<16x128xbf16>
      %c0_99 = arith.constant 0 : index
      %c0_100 = arith.constant 0 : index
      %258 = vector.load %arg5[%c0_99, %c0_100] : memref<128x128xbf16, #tpu.memory_space<vmem>>, vector<128x128xbf16>
      %cst_101 = arith.constant dense<0.000000e+00> : vector<16x128xf32>
      %259 = tpu.matmul %257, %258, %cst_101 {dimension_numbers = #tpu.dot_dimension_numbers<[1], [0], [0], [1], [0, 0, 1, 1], [], []>} : vector<16x128xbf16>, vector<128x128xbf16>, vector<16x128xf32> -> vector<16x128xf32>
      %c0_102 = arith.constant 0 : index
      %c0_103 = arith.constant 0 : index
      %260 = vector.load %arg6[%c0_102, %c0_103] : memref<1x128xf32, #tpu.memory_space<vmem>>, vector<1x128xf32>
      %261 = vector.broadcast %260 : vector<1x128xf32> to vector<16x128xf32>
      %262 = arith.addf %259, %261 : vector<16x128xf32>
      %cst_104 = arith.constant 0.000000e+00 : f32
      %263 = vector.broadcast %cst_104 : f32 to vector<16x128xf32>
      %264 = arith.maximumf %262, %263 : vector<16x128xf32>
      %cst_105 = arith.constant 1.000000e+00 : f32
      %265 = vector.broadcast %cst_105 : f32 to vector<16x128xf32>
      %266 = arith.mulf %264, %265 : vector<16x128xf32>
      %c0_106 = arith.constant 0 : index
      %c0_107 = arith.constant 0 : index
      %267 = vector.load %arg4[%c0_106, %c0_107] : memref<16x128xf32, #tpu.memory_space<vmem>>, vector<16x128xf32>
      %268 = arith.addf %266, %267 : vector<16x128xf32>
      %c0_108 = arith.constant 0 : index
      %c0_109 = arith.constant 0 : index
      %269 = vector.load %arg21[%c0_108, %c0_109] : memref<16x128xf32, #tpu.memory_space<vmem>>, vector<16x128xf32>
      tpu.vector_store %arg21[%c0_108, %c0_109], %268 {strides = array<i32>} : memref<16x128xf32, #tpu.memory_space<vmem>>, vector<16x128xf32>,
    } else {
    }
    %c0 = arith.constant 0 : index
    %c0_1 = arith.constant 0 : index
    %3 = vector.load %arg21[%c0, %c0_1] : memref<16x128xf32, #tpu.memory_space<vmem>>, vector<16x128xf32>
    %4 = arith.truncf %3 : vector<16x128xf32> to vector<16x128xbf16>
    %c0_2 = arith.constant 0 : index
    %c0_3 = arith.constant 0 : index
    %c0_4 = arith.constant 0 : index
    %5 = vector.load %arg7[%c0_2, %c0_3, %c0_4] : memref<1x128x384xbf16, #tpu.memory_space<vmem>>, vector<1x128x384xbf16>
    %6 = vector.shape_cast %5 : vector<1x128x384xbf16> to vector<128x384xbf16>
    %cst = arith.constant dense<0.000000e+00> : vector<16x384xf32>
    %7 = tpu.matmul %4, %6, %cst {dimension_numbers = #tpu.dot_dimension_numbers<[1], [0], [0], [1], [0, 0, 1, 1], [], []>} : vector<16x128xbf16>, vector<128x384xbf16>, vector<16x384xf32> -> vector<16x384xf32>
    %8 = vector.extract_strided_slice %7 {offsets = [0, 0], sizes = [16, 16], strides = [1, 1]} : vector<16x384xf32> to vector<16x16xf32>
    %9 = vector.shape_cast %8 : vector<16x16xf32> to vector<1x16x16xf32>
    %10 = vector.extract_strided_slice %7 {offsets = [0, 128], sizes = [16, 16], strides = [1, 1]} : vector<16x384xf32> to vector<16x16xf32>
    %11 = vector.shape_cast %10 : vector<16x16xf32> to vector<1x16x16xf32>
    %12 = vector.extract_strided_slice %7 {offsets = [0, 256], sizes = [16, 16], strides = [1, 1]} : vector<16x384xf32> to vector<16x16xf32>
    %13 = vector.shape_cast %12 : vector<16x16xf32> to vector<1x16x16xf32>
    "tpu.trace_start"() <{level = 10 : i32, message = "bqd,bkd->bqk"}> : () -> ()
    %cst_5 = arith.constant dense<0.000000e+00> : vector<1x16x16xf32>
    %14 = tpu.matmul %9, %11, %cst_5 {dimension_numbers = #tpu.dot_dimension_numbers<[2], [2], [1], [1], [0, 0, 0, 1, 1, 1], [0], [0]>} : vector<1x16x16xf32>, vector<1x16x16xf32>, vector<1x16x16xf32> -> vector<1x16x16xf32>
    "tpu.trace_stop"() : () -> ()
    %cst_6 = arith.constant dense<0xFF800000> : vector<1x16xf32>
    %15 = vector.multi_reduction <maximumf>, %14, %cst_6 [2] : vector<1x16x16xf32> to vector<1x16xf32>
    %16 = vector.shape_cast %15 : vector<1x16xf32> to vector<1x16x1xf32>
    %17 = vector.broadcast %16 : vector<1x16x1xf32> to vector<1x16x16xf32>
    %18 = arith.subf %14, %17 : vector<1x16x16xf32>
    %19 = math.exp %18 : vector<1x16x16xf32>
    %cst_7 = arith.constant dense<0.000000e+00> : vector<1x16xf32>
    %20 = vector.multi_reduction <add>, %19, %cst_7 [2] : vector<1x16x16xf32> to vector<1x16xf32>
    %21 = vector.shape_cast %20 : vector<1x16xf32> to vector<1x16x1xf32>
    %22 = tpu.reciprocal %21 {approx = true} : vector<1x16x1xf32> -> vector<1x16x1xf32>
    %23 = vector.broadcast %22 : vector<1x16x1xf32> to vector<1x16x16xf32>
    %24 = arith.mulf %19, %23 : vector<1x16x16xf32>
    "tpu.trace_start"() <{level = 10 : i32, message = "bqk,bkd->bqd"}> : () -> ()
    %cst_8 = arith.constant dense<0.000000e+00> : vector<1x16x16xf32>
    %25 = tpu.matmul %24, %13, %cst_8 {dimension_numbers = #tpu.dot_dimension_numbers<[2], [1], [1], [2], [0, 0, 0, 1, 1, 2], [0], [0]>} : vector<1x16x16xf32>, vector<1x16x16xf32>, vector<1x16x16xf32> -> vector<1x16x16xf32>
    "tpu.trace_stop"() : () -> ()
    %26 = vector.shape_cast %25 : vector<1x16x16xf32> to vector<16x16xf32>
    %c0_9 = arith.constant 0 : index
    %c0_10 = arith.constant 0 : index
    %27 = vector.load %arg22[%c0_9, %c0_10] : memref<16x128xf32, #tpu.memory_space<vmem>>, vector<16x16xf32>
    tpu.vector_store %arg22[%c0_9, %c0_10], %26 {strides = array<i32>} : memref<16x128xf32, #tpu.memory_space<vmem>>, vector<16x16xf32>,
    %28 = vector.extract_strided_slice %7 {offsets = [0, 16], sizes = [16, 16], strides = [1, 1]} : vector<16x384xf32> to vector<16x16xf32>
    %29 = vector.shape_cast %28 : vector<16x16xf32> to vector<1x16x16xf32>
    %30 = vector.extract_strided_slice %7 {offsets = [0, 144], sizes = [16, 16], strides = [1, 1]} : vector<16x384xf32> to vector<16x16xf32>
    %31 = vector.shape_cast %30 : vector<16x16xf32> to vector<1x16x16xf32>
    %32 = vector.extract_strided_slice %7 {offsets = [0, 272], sizes = [16, 16], strides = [1, 1]} : vector<16x384xf32> to vector<16x16xf32>
    %33 = vector.shape_cast %32 : vector<16x16xf32> to vector<1x16x16xf32>
    "tpu.trace_start"() <{level = 10 : i32, message = "bqd,bkd->bqk"}> : () -> ()
    %cst_11 = arith.constant dense<0.000000e+00> : vector<1x16x16xf32>
    %34 = tpu.matmul %29, %31, %cst_11 {dimension_numbers = #tpu.dot_dimension_numbers<[2], [2], [1], [1], [0, 0, 0, 1, 1, 1], [0], [0]>} : vector<1x16x16xf32>, vector<1x16x16xf32>, vector<1x16x16xf32> -> vector<1x16x16xf32>
    "tpu.trace_stop"() : () -> ()
    %cst_12 = arith.constant dense<0xFF800000> : vector<1x16xf32>
    %35 = vector.multi_reduction <maximumf>, %34, %cst_12 [2] : vector<1x16x16xf32> to vector<1x16xf32>
    %36 = vector.shape_cast %35 : vector<1x16xf32> to vector<1x16x1xf32>
    %37 = vector.broadcast %36 : vector<1x16x1xf32> to vector<1x16x16xf32>
    %38 = arith.subf %34, %37 : vector<1x16x16xf32>
    %39 = math.exp %38 : vector<1x16x16xf32>
    %cst_13 = arith.constant dense<0.000000e+00> : vector<1x16xf32>
    %40 = vector.multi_reduction <add>, %39, %cst_13 [2] : vector<1x16x16xf32> to vector<1x16xf32>
    %41 = vector.shape_cast %40 : vector<1x16xf32> to vector<1x16x1xf32>
    %42 = tpu.reciprocal %41 {approx = true} : vector<1x16x1xf32> -> vector<1x16x1xf32>
    %43 = vector.broadcast %42 : vector<1x16x1xf32> to vector<1x16x16xf32>
    %44 = arith.mulf %39, %43 : vector<1x16x16xf32>
    "tpu.trace_start"() <{level = 10 : i32, message = "bqk,bkd->bqd"}> : () -> ()
    %cst_14 = arith.constant dense<0.000000e+00> : vector<1x16x16xf32>
    %45 = tpu.matmul %44, %33, %cst_14 {dimension_numbers = #tpu.dot_dimension_numbers<[2], [1], [1], [2], [0, 0, 0, 1, 1, 2], [0], [0]>} : vector<1x16x16xf32>, vector<1x16x16xf32>, vector<1x16x16xf32> -> vector<1x16x16xf32>
    "tpu.trace_stop"() : () -> ()
    %46 = vector.shape_cast %45 : vector<1x16x16xf32> to vector<16x16xf32>
    %c0_15 = arith.constant 0 : index
    %c16 = arith.constant 16 : index
    %47 = vector.load %arg22[%c0_15, %c16] : memref<16x128xf32, #tpu.memory_space<vmem>>, vector<16x16xf32>
    tpu.vector_store %arg22[%c0_15, %c16], %46 {strides = array<i32>} : memref<16x128xf32, #tpu.memory_space<vmem>>, vector<16x16xf32>,
    %48 = vector.extract_strided_slice %7 {offsets = [0, 32], sizes = [16, 16], strides = [1, 1]} : vector<16x384xf32> to vector<16x16xf32>
    %49 = vector.shape_cast %48 : vector<16x16xf32> to vector<1x16x16xf32>
    %50 = vector.extract_strided_slice %7 {offsets = [0, 160], sizes = [16, 16], strides = [1, 1]} : vector<16x384xf32> to vector<16x16xf32>
    %51 = vector.shape_cast %50 : vector<16x16xf32> to vector<1x16x16xf32>
    %52 = vector.extract_strided_slice %7 {offsets = [0, 288], sizes = [16, 16], strides = [1, 1]} : vector<16x384xf32> to vector<16x16xf32>
    %53 = vector.shape_cast %52 : vector<16x16xf32> to vector<1x16x16xf32>
    "tpu.trace_start"() <{level = 10 : i32, message = "bqd,bkd->bqk"}> : () -> ()
    %cst_16 = arith.constant dense<0.000000e+00> : vector<1x16x16xf32>
    %54 = tpu.matmul %49, %51, %cst_16 {dimension_numbers = #tpu.dot_dimension_numbers<[2], [2], [1], [1], [0, 0, 0, 1, 1, 1], [0], [0]>} : vector<1x16x16xf32>, vector<1x16x16xf32>, vector<1x16x16xf32> -> vector<1x16x16xf32>
    "tpu.trace_stop"() : () -> ()
    %cst_17 = arith.constant dense<0xFF800000> : vector<1x16xf32>
    %55 = vector.multi_reduction <maximumf>, %54, %cst_17 [2] : vector<1x16x16xf32> to vector<1x16xf32>
    %56 = vector.shape_cast %55 : vector<1x16xf32> to vector<1x16x1xf32>
    %57 = vector.broadcast %56 : vector<1x16x1xf32> to vector<1x16x16xf32>
    %58 = arith.subf %54, %57 : vector<1x16x16xf32>
    %59 = math.exp %58 : vector<1x16x16xf32>
    %cst_18 = arith.constant dense<0.000000e+00> : vector<1x16xf32>
    %60 = vector.multi_reduction <add>, %59, %cst_18 [2] : vector<1x16x16xf32> to vector<1x16xf32>
    %61 = vector.shape_cast %60 : vector<1x16xf32> to vector<1x16x1xf32>
    %62 = tpu.reciprocal %61 {approx = true} : vector<1x16x1xf32> -> vector<1x16x1xf32>
    %63 = vector.broadcast %62 : vector<1x16x1xf32> to vector<1x16x16xf32>
    %64 = arith.mulf %59, %63 : vector<1x16x16xf32>
    "tpu.trace_start"() <{level = 10 : i32, message = "bqk,bkd->bqd"}> : () -> ()
    %cst_19 = arith.constant dense<0.000000e+00> : vector<1x16x16xf32>
    %65 = tpu.matmul %64, %53, %cst_19 {dimension_numbers = #tpu.dot_dimension_numbers<[2], [1], [1], [2], [0, 0, 0, 1, 1, 2], [0], [0]>} : vector<1x16x16xf32>, vector<1x16x16xf32>, vector<1x16x16xf32> -> vector<1x16x16xf32>
    "tpu.trace_stop"() : () -> ()
    %66 = vector.shape_cast %65 : vector<1x16x16xf32> to vector<16x16xf32>
    %c0_20 = arith.constant 0 : index
    %c32 = arith.constant 32 : index
    %67 = vector.load %arg22[%c0_20, %c32] : memref<16x128xf32, #tpu.memory_space<vmem>>, vector<16x16xf32>
    tpu.vector_store %arg22[%c0_20, %c32], %66 {strides = array<i32>} : memref<16x128xf32, #tpu.memory_space<vmem>>, vector<16x16xf32>,
    %68 = vector.extract_strided_slice %7 {offsets = [0, 48], sizes = [16, 16], strides = [1, 1]} : vector<16x384xf32> to vector<16x16xf32>
    %69 = vector.shape_cast %68 : vector<16x16xf32> to vector<1x16x16xf32>
    %70 = vector.extract_strided_slice %7 {offsets = [0, 176], sizes = [16, 16], strides = [1, 1]} : vector<16x384xf32> to vector<16x16xf32>
    %71 = vector.shape_cast %70 : vector<16x16xf32> to vector<1x16x16xf32>
    %72 = vector.extract_strided_slice %7 {offsets = [0, 304], sizes = [16, 16], strides = [1, 1]} : vector<16x384xf32> to vector<16x16xf32>
    %73 = vector.shape_cast %72 : vector<16x16xf32> to vector<1x16x16xf32>
    "tpu.trace_start"() <{level = 10 : i32, message = "bqd,bkd->bqk"}> : () -> ()
    %cst_21 = arith.constant dense<0.000000e+00> : vector<1x16x16xf32>
    %74 = tpu.matmul %69, %71, %cst_21 {dimension_numbers = #tpu.dot_dimension_numbers<[2], [2], [1], [1], [0, 0, 0, 1, 1, 1], [0], [0]>} : vector<1x16x16xf32>, vector<1x16x16xf32>, vector<1x16x16xf32> -> vector<1x16x16xf32>
    "tpu.trace_stop"() : () -> ()
    %cst_22 = arith.constant dense<0xFF800000> : vector<1x16xf32>
    %75 = vector.multi_reduction <maximumf>, %74, %cst_22 [2] : vector<1x16x16xf32> to vector<1x16xf32>
    %76 = vector.shape_cast %75 : vector<1x16xf32> to vector<1x16x1xf32>
    %77 = vector.broadcast %76 : vector<1x16x1xf32> to vector<1x16x16xf32>
    %78 = arith.subf %74, %77 : vector<1x16x16xf32>
    %79 = math.exp %78 : vector<1x16x16xf32>
    %cst_23 = arith.constant dense<0.000000e+00> : vector<1x16xf32>
    %80 = vector.multi_reduction <add>, %79, %cst_23 [2] : vector<1x16x16xf32> to vector<1x16xf32>
    %81 = vector.shape_cast %80 : vector<1x16xf32> to vector<1x16x1xf32>
    %82 = tpu.reciprocal %81 {approx = true} : vector<1x16x1xf32> -> vector<1x16x1xf32>
    %83 = vector.broadcast %82 : vector<1x16x1xf32> to vector<1x16x16xf32>
    %84 = arith.mulf %79, %83 : vector<1x16x16xf32>
    "tpu.trace_start"() <{level = 10 : i32, message = "bqk,bkd->bqd"}> : () -> ()
    %cst_24 = arith.constant dense<0.000000e+00> : vector<1x16x16xf32>
    %85 = tpu.matmul %84, %73, %cst_24 {dimension_numbers = #tpu.dot_dimension_numbers<[2], [1], [1], [2], [0, 0, 0, 1, 1, 2], [0], [0]>} : vector<1x16x16xf32>, vector<1x16x16xf32>, vector<1x16x16xf32> -> vector<1x16x16xf32>
    "tpu.trace_stop"() : () -> ()
    %86 = vector.shape_cast %85 : vector<1x16x16xf32> to vector<16x16xf32>
    %c0_25 = arith.constant 0 : index
    %c48 = arith.constant 48 : index
    %87 = vector.load %arg22[%c0_25, %c48] : memref<16x128xf32, #tpu.memory_space<vmem>>, vector<16x16xf32>
    tpu.vector_store %arg22[%c0_25, %c48], %86 {strides = array<i32>} : memref<16x128xf32, #tpu.memory_space<vmem>>, vector<16x16xf32>,
    %88 = vector.extract_strided_slice %7 {offsets = [0, 64], sizes = [16, 16], strides = [1, 1]} : vector<16x384xf32> to vector<16x16xf32>
    %89 = vector.shape_cast %88 : vector<16x16xf32> to vector<1x16x16xf32>
    %90 = vector.extract_strided_slice %7 {offsets = [0, 192], sizes = [16, 16], strides = [1, 1]} : vector<16x384xf32> to vector<16x16xf32>
    %91 = vector.shape_cast %90 : vector<16x16xf32> to vector<1x16x16xf32>
    %92 = vector.extract_strided_slice %7 {offsets = [0, 320], sizes = [16, 16], strides = [1, 1]} : vector<16x384xf32> to vector<16x16xf32>
    %93 = vector.shape_cast %92 : vector<16x16xf32> to vector<1x16x16xf32>
    "tpu.trace_start"() <{level = 10 : i32, message = "bqd,bkd->bqk"}> : () -> ()
    %cst_26 = arith.constant dense<0.000000e+00> : vector<1x16x16xf32>
    %94 = tpu.matmul %89, %91, %cst_26 {dimension_numbers = #tpu.dot_dimension_numbers<[2], [2], [1], [1], [0, 0, 0, 1, 1, 1], [0], [0]>} : vector<1x16x16xf32>, vector<1x16x16xf32>, vector<1x16x16xf32> -> vector<1x16x16xf32>
    "tpu.trace_stop"() : () -> ()
    %cst_27 = arith.constant dense<0xFF800000> : vector<1x16xf32>
    %95 = vector.multi_reduction <maximumf>, %94, %cst_27 [2] : vector<1x16x16xf32> to vector<1x16xf32>
    %96 = vector.shape_cast %95 : vector<1x16xf32> to vector<1x16x1xf32>
    %97 = vector.broadcast %96 : vector<1x16x1xf32> to vector<1x16x16xf32>
    %98 = arith.subf %94, %97 : vector<1x16x16xf32>
    %99 = math.exp %98 : vector<1x16x16xf32>
    %cst_28 = arith.constant dense<0.000000e+00> : vector<1x16xf32>
    %100 = vector.multi_reduction <add>, %99, %cst_28 [2] : vector<1x16x16xf32> to vector<1x16xf32>
    %101 = vector.shape_cast %100 : vector<1x16xf32> to vector<1x16x1xf32>
    %102 = tpu.reciprocal %101 {approx = true} : vector<1x16x1xf32> -> vector<1x16x1xf32>
    %103 = vector.broadcast %102 : vector<1x16x1xf32> to vector<1x16x16xf32>
    %104 = arith.mulf %99, %103 : vector<1x16x16xf32>
    "tpu.trace_start"() <{level = 10 : i32, message = "bqk,bkd->bqd"}> : () -> ()
    %cst_29 = arith.constant dense<0.000000e+00> : vector<1x16x16xf32>
    %105 = tpu.matmul %104, %93, %cst_29 {dimension_numbers = #tpu.dot_dimension_numbers<[2], [1], [1], [2], [0, 0, 0, 1, 1, 2], [0], [0]>} : vector<1x16x16xf32>, vector<1x16x16xf32>, vector<1x16x16xf32> -> vector<1x16x16xf32>
    "tpu.trace_stop"() : () -> ()
    %106 = vector.shape_cast %105 : vector<1x16x16xf32> to vector<16x16xf32>
    %c0_30 = arith.constant 0 : index
    %c64 = arith.constant 64 : index
    %107 = vector.load %arg22[%c0_30, %c64] : memref<16x128xf32, #tpu.memory_space<vmem>>, vector<16x16xf32>
    tpu.vector_store %arg22[%c0_30, %c64], %106 {strides = array<i32>} : memref<16x128xf32, #tpu.memory_space<vmem>>, vector<16x16xf32>,
    %108 = vector.extract_strided_slice %7 {offsets = [0, 80], sizes = [16, 16], strides = [1, 1]} : vector<16x384xf32> to vector<16x16xf32>
    %109 = vector.shape_cast %108 : vector<16x16xf32> to vector<1x16x16xf32>
    %110 = vector.extract_strided_slice %7 {offsets = [0, 208], sizes = [16, 16], strides = [1, 1]} : vector<16x384xf32> to vector<16x16xf32>
    %111 = vector.shape_cast %110 : vector<16x16xf32> to vector<1x16x16xf32>
    %112 = vector.extract_strided_slice %7 {offsets = [0, 336], sizes = [16, 16], strides = [1, 1]} : vector<16x384xf32> to vector<16x16xf32>
    %113 = vector.shape_cast %112 : vector<16x16xf32> to vector<1x16x16xf32>
    "tpu.trace_start"() <{level = 10 : i32, message = "bqd,bkd->bqk"}> : () -> ()
    %cst_31 = arith.constant dense<0.000000e+00> : vector<1x16x16xf32>
    %114 = tpu.matmul %109, %111, %cst_31 {dimension_numbers = #tpu.dot_dimension_numbers<[2], [2], [1], [1], [0, 0, 0, 1, 1, 1], [0], [0]>} : vector<1x16x16xf32>, vector<1x16x16xf32>, vector<1x16x16xf32> -> vector<1x16x16xf32>
    "tpu.trace_stop"() : () -> ()
    %cst_32 = arith.constant dense<0xFF800000> : vector<1x16xf32>
    %115 = vector.multi_reduction <maximumf>, %114, %cst_32 [2] : vector<1x16x16xf32> to vector<1x16xf32>
    %116 = vector.shape_cast %115 : vector<1x16xf32> to vector<1x16x1xf32>
    %117 = vector.broadcast %116 : vector<1x16x1xf32> to vector<1x16x16xf32>
    %118 = arith.subf %114, %117 : vector<1x16x16xf32>
    %119 = math.exp %118 : vector<1x16x16xf32>
    %cst_33 = arith.constant dense<0.000000e+00> : vector<1x16xf32>
    %120 = vector.multi_reduction <add>, %119, %cst_33 [2] : vector<1x16x16xf32> to vector<1x16xf32>
    %121 = vector.shape_cast %120 : vector<1x16xf32> to vector<1x16x1xf32>
    %122 = tpu.reciprocal %121 {approx = true} : vector<1x16x1xf32> -> vector<1x16x1xf32>
    %123 = vector.broadcast %122 : vector<1x16x1xf32> to vector<1x16x16xf32>
    %124 = arith.mulf %119, %123 : vector<1x16x16xf32>
    "tpu.trace_start"() <{level = 10 : i32, message = "bqk,bkd->bqd"}> : () -> ()
    %cst_34 = arith.constant dense<0.000000e+00> : vector<1x16x16xf32>
    %125 = tpu.matmul %124, %113, %cst_34 {dimension_numbers = #tpu.dot_dimension_numbers<[2], [1], [1], [2], [0, 0, 0, 1, 1, 2], [0], [0]>} : vector<1x16x16xf32>, vector<1x16x16xf32>, vector<1x16x16xf32> -> vector<1x16x16xf32>
    "tpu.trace_stop"() : () -> ()
    %126 = vector.shape_cast %125 : vector<1x16x16xf32> to vector<16x16xf32>
    %c0_35 = arith.constant 0 : index
    %c80 = arith.constant 80 : index
    %127 = vector.load %arg22[%c0_35, %c80] : memref<16x128xf32, #tpu.memory_space<vmem>>, vector<16x16xf32>
    tpu.vector_store %arg22[%c0_35, %c80], %126 {strides = array<i32>} : memref<16x128xf32, #tpu.memory_space<vmem>>, vector<16x16xf32>,
    %128 = vector.extract_strided_slice %7 {offsets = [0, 96], sizes = [16, 16], strides = [1, 1]} : vector<16x384xf32> to vector<16x16xf32>
    %129 = vector.shape_cast %128 : vector<16x16xf32> to vector<1x16x16xf32>
    %130 = vector.extract_strided_slice %7 {offsets = [0, 224], sizes = [16, 16], strides = [1, 1]} : vector<16x384xf32> to vector<16x16xf32>
    %131 = vector.shape_cast %130 : vector<16x16xf32> to vector<1x16x16xf32>
    %132 = vector.extract_strided_slice %7 {offsets = [0, 352], sizes = [16, 16], strides = [1, 1]} : vector<16x384xf32> to vector<16x16xf32>
    %133 = vector.shape_cast %132 : vector<16x16xf32> to vector<1x16x16xf32>
    "tpu.trace_start"() <{level = 10 : i32, message = "bqd,bkd->bqk"}> : () -> ()
    %cst_36 = arith.constant dense<0.000000e+00> : vector<1x16x16xf32>
    %134 = tpu.matmul %129, %131, %cst_36 {dimension_numbers = #tpu.dot_dimension_numbers<[2], [2], [1], [1], [0, 0, 0, 1, 1, 1], [0], [0]>} : vector<1x16x16xf32>, vector<1x16x16xf32>, vector<1x16x16xf32> -> vector<1x16x16xf32>
    "tpu.trace_stop"() : () -> ()
    %cst_37 = arith.constant dense<0xFF800000> : vector<1x16xf32>
    %135 = vector.multi_reduction <maximumf>, %134, %cst_37 [2] : vector<1x16x16xf32> to vector<1x16xf32>
    %136 = vector.shape_cast %135 : vector<1x16xf32> to vector<1x16x1xf32>
    %137 = vector.broadcast %136 : vector<1x16x1xf32> to vector<1x16x16xf32>
    %138 = arith.subf %134, %137 : vector<1x16x16xf32>
    %139 = math.exp %138 : vector<1x16x16xf32>
    %cst_38 = arith.constant dense<0.000000e+00> : vector<1x16xf32>
    %140 = vector.multi_reduction <add>, %139, %cst_38 [2] : vector<1x16x16xf32> to vector<1x16xf32>
    %141 = vector.shape_cast %140 : vector<1x16xf32> to vector<1x16x1xf32>
    %142 = tpu.reciprocal %141 {approx = true} : vector<1x16x1xf32> -> vector<1x16x1xf32>
    %143 = vector.broadcast %142 : vector<1x16x1xf32> to vector<1x16x16xf32>
    %144 = arith.mulf %139, %143 : vector<1x16x16xf32>
    "tpu.trace_start"() <{level = 10 : i32, message = "bqk,bkd->bqd"}> : () -> ()
    %cst_39 = arith.constant dense<0.000000e+00> : vector<1x16x16xf32>
    %145 = tpu.matmul %144, %133, %cst_39 {dimension_numbers = #tpu.dot_dimension_numbers<[2], [1], [1], [2], [0, 0, 0, 1, 1, 2], [0], [0]>} : vector<1x16x16xf32>, vector<1x16x16xf32>, vector<1x16x16xf32> -> vector<1x16x16xf32>
    "tpu.trace_stop"() : () -> ()
    %146 = vector.shape_cast %145 : vector<1x16x16xf32> to vector<16x16xf32>
    %c0_40 = arith.constant 0 : index
    %c96 = arith.constant 96 : index
    %147 = vector.load %arg22[%c0_40, %c96] : memref<16x128xf32, #tpu.memory_space<vmem>>, vector<16x16xf32>
    tpu.vector_store %arg22[%c0_40, %c96], %146 {strides = array<i32>} : memref<16x128xf32, #tpu.memory_space<vmem>>, vector<16x16xf32>,
    %148 = vector.extract_strided_slice %7 {offsets = [0, 112], sizes = [16, 16], strides = [1, 1]} : vector<16x384xf32> to vector<16x16xf32>
    %149 = vector.shape_cast %148 : vector<16x16xf32> to vector<1x16x16xf32>
    %150 = vector.extract_strided_slice %7 {offsets = [0, 240], sizes = [16, 16], strides = [1, 1]} : vector<16x384xf32> to vector<16x16xf32>
    %151 = vector.shape_cast %150 : vector<16x16xf32> to vector<1x16x16xf32>
    %152 = vector.extract_strided_slice %7 {offsets = [0, 368], sizes = [16, 16], strides = [1, 1]} : vector<16x384xf32> to vector<16x16xf32>
    %153 = vector.shape_cast %152 : vector<16x16xf32> to vector<1x16x16xf32>
    "tpu.trace_start"() <{level = 10 : i32, message = "bqd,bkd->bqk"}> : () -> ()
    %cst_41 = arith.constant dense<0.000000e+00> : vector<1x16x16xf32>
    %154 = tpu.matmul %149, %151, %cst_41 {dimension_numbers = #tpu.dot_dimension_numbers<[2], [2], [1], [1], [0, 0, 0, 1, 1, 1], [0], [0]>} : vector<1x16x16xf32>, vector<1x16x16xf32>, vector<1x16x16xf32> -> vector<1x16x16xf32>
    "tpu.trace_stop"() : () -> ()
    %cst_42 = arith.constant dense<0xFF800000> : vector<1x16xf32>
    %155 = vector.multi_reduction <maximumf>, %154, %cst_42 [2] : vector<1x16x16xf32> to vector<1x16xf32>
    %156 = vector.shape_cast %155 : vector<1x16xf32> to vector<1x16x1xf32>
    %157 = vector.broadcast %156 : vector<1x16x1xf32> to vector<1x16x16xf32>
    %158 = arith.subf %154, %157 : vector<1x16x16xf32>
    %159 = math.exp %158 : vector<1x16x16xf32>
    %cst_43 = arith.constant dense<0.000000e+00> : vector<1x16xf32>
    %160 = vector.multi_reduction <add>, %159, %cst_43 [2] : vector<1x16x16xf32> to vector<1x16xf32>
    %161 = vector.shape_cast %160 : vector<1x16xf32> to vector<1x16x1xf32>
    %162 = tpu.reciprocal %161 {approx = true} : vector<1x16x1xf32> -> vector<1x16x1xf32>
    %163 = vector.broadcast %162 : vector<1x16x1xf32> to vector<1x16x16xf32>
    %164 = arith.mulf %159, %163 : vector<1x16x16xf32>
    "tpu.trace_start"() <{level = 10 : i32, message = "bqk,bkd->bqd"}> : () -> ()
    %cst_44 = arith.constant dense<0.000000e+00> : vector<1x16x16xf32>
    %165 = tpu.matmul %164, %153, %cst_44 {dimension_numbers = #tpu.dot_dimension_numbers<[2], [1], [1], [2], [0, 0, 0, 1, 1, 2], [0], [0]>} : vector<1x16x16xf32>, vector<1x16x16xf32>, vector<1x16x16xf32> -> vector<1x16x16xf32>
    "tpu.trace_stop"() : () -> ()
    %166 = vector.shape_cast %165 : vector<1x16x16xf32> to vector<16x16xf32>
    %c0_45 = arith.constant 0 : index
    %c112 = arith.constant 112 : index
    %167 = vector.load %arg22[%c0_45, %c112] : memref<16x128xf32, #tpu.memory_space<vmem>>, vector<16x16xf32>
    tpu.vector_store %arg22[%c0_45, %c112], %166 {strides = array<i32>} : memref<16x128xf32, #tpu.memory_space<vmem>>, vector<16x16xf32>,
    %c0_46 = arith.constant 0 : index
    %c0_47 = arith.constant 0 : index
    %168 = vector.load %arg22[%c0_46, %c0_47] : memref<16x128xf32, #tpu.memory_space<vmem>>, vector<16x128xf32>
    %169 = arith.truncf %168 : vector<16x128xf32> to vector<16x128xbf16>
    %c0_48 = arith.constant 0 : index
    %c0_49 = arith.constant 0 : index
    %c0_50 = arith.constant 0 : index
    %170 = vector.load %arg8[%c0_48, %c0_49, %c0_50] : memref<1x128x128xbf16, #tpu.memory_space<vmem>>, vector<1x128x128xbf16>
    %171 = vector.shape_cast %170 : vector<1x128x128xbf16> to vector<128x128xbf16>
    %cst_51 = arith.constant dense<0.000000e+00> : vector<16x128xf32>
    %172 = tpu.matmul %169, %171, %cst_51 {dimension_numbers = #tpu.dot_dimension_numbers<[1], [0], [0], [1], [0, 0, 1, 1], [], []>} : vector<16x128xbf16>, vector<128x128xbf16>, vector<16x128xf32> -> vector<16x128xf32>
    %c0_52 = arith.constant 0 : index
    %c0_53 = arith.constant 0 : index
    %c0_54 = arith.constant 0 : index
    %173 = vector.load %arg9[%c0_52, %c0_53, %c0_54] : memref<1x1x128xf32, #tpu.memory_space<vmem>>, vector<1x1x128xf32>
    %174 = vector.shape_cast %173 : vector<1x1x128xf32> to vector<1x128xf32>
    %175 = vector.broadcast %174 : vector<1x128xf32> to vector<16x128xf32>
    %176 = arith.addf %172, %175 : vector<16x128xf32>
    %177 = arith.addf %176, %3 : vector<16x128xf32>
    %c0_55 = arith.constant 0 : index
    %c0_56 = arith.constant 0 : index
    %c0_57 = arith.constant 0 : index
    %178 = vector.load %arg10[%c0_55, %c0_56, %c0_57] : memref<1x1x128xf32, #tpu.memory_space<vmem>>, vector<1x1x128xf32>
    %179 = vector.shape_cast %178 : vector<1x1x128xf32> to vector<1x128xf32>
    %c0_58 = arith.constant 0 : index
    %c0_59 = arith.constant 0 : index
    %c0_60 = arith.constant 0 : index
    %180 = vector.load %arg11[%c0_58, %c0_59, %c0_60] : memref<1x1x128xf32, #tpu.memory_space<vmem>>, vector<1x1x128xf32>
    %181 = vector.shape_cast %180 : vector<1x1x128xf32> to vector<1x128xf32>
    %cst_61 = arith.constant dense<0.000000e+00> : vector<16xf32>
    %182 = vector.multi_reduction <add>, %177, %cst_61 [1] : vector<16x128xf32> to vector<16xf32>
    %183 = vector.shape_cast %182 : vector<16xf32> to vector<16x1xf32>
    %cst_62 = arith.constant 1.280000e+02 : f32
    %184 = vector.broadcast %cst_62 : f32 to vector<16x1xf32>
    %185 = arith.divf %183, %184 : vector<16x1xf32>
    %186 = vector.broadcast %185 : vector<16x1xf32> to vector<16x128xf32>
    %187 = arith.subf %177, %186 : vector<16x128xf32>
    %188 = arith.mulf %187, %187 : vector<16x128xf32>
    %cst_63 = arith.constant dense<0.000000e+00> : vector<16xf32>
    %189 = vector.multi_reduction <add>, %188, %cst_63 [1] : vector<16x128xf32> to vector<16xf32>
    %190 = vector.shape_cast %189 : vector<16xf32> to vector<16x1xf32>
    %cst_64 = arith.constant 1.280000e+02 : f32
    %191 = vector.broadcast %cst_64 : f32 to vector<16x1xf32>
    %192 = arith.divf %190, %191 : vector<16x1xf32>
    %cst_65 = arith.constant 9.99999974E-6 : f32
    %193 = vector.broadcast %cst_65 : f32 to vector<16x1xf32>
    %194 = arith.addf %192, %193 : vector<16x1xf32>
    %195 = math.rsqrt %194 : vector<16x1xf32>
    %196 = vector.broadcast %195 : vector<16x1xf32> to vector<16x128xf32>
    %197 = arith.mulf %187, %196 : vector<16x128xf32>
    %198 = vector.broadcast %179 : vector<1x128xf32> to vector<16x128xf32>
    %199 = arith.mulf %197, %198 : vector<16x128xf32>
    %200 = vector.broadcast %181 : vector<1x128xf32> to vector<16x128xf32>
    %201 = arith.addf %199, %200 : vector<16x128xf32>
    %202 = arith.truncf %201 : vector<16x128xf32> to vector<16x128xbf16>
    %c0_66 = arith.constant 0 : index
    %c0_67 = arith.constant 0 : index
    %c0_68 = arith.constant 0 : index
    %203 = vector.load %arg12[%c0_66, %c0_67, %c0_68] : memref<1x128x128xbf16, #tpu.memory_space<vmem>>, vector<1x128x128xbf16>
    %204 = vector.shape_cast %203 : vector<1x128x128xbf16> to vector<128x128xbf16>
    %cst_69 = arith.constant dense<0.000000e+00> : vector<16x128xf32>
    %205 = tpu.matmul %202, %204, %cst_69 {dimension_numbers = #tpu.dot_dimension_numbers<[1], [0], [0], [1], [0, 0, 1, 1], [], []>} : vector<16x128xbf16>, vector<128x128xbf16>, vector<16x128xf32> -> vector<16x128xf32>
    %c0_70 = arith.constant 0 : index
    %c0_71 = arith.constant 0 : index
    %c0_72 = arith.constant 0 : index
    %206 = vector.load %arg13[%c0_70, %c0_71, %c0_72] : memref<1x1x128xf32, #tpu.memory_space<vmem>>, vector<1x1x128xf32>
    %207 = vector.shape_cast %206 : vector<1x1x128xf32> to vector<1x128xf32>
    %208 = vector.broadcast %207 : vector<1x128xf32> to vector<16x128xf32>
    %209 = arith.addf %205, %208 : vector<16x128xf32>
    %210 = arith.negf %209 : vector<16x128xf32>
    %211 = math.exp %210 : vector<16x128xf32>
    %cst_73 = arith.constant 1.000000e+00 : f32
    %212 = vector.broadcast %cst_73 : f32 to vector<16x128xf32>
    %213 = arith.addf %212, %211 : vector<16x128xf32>
    %214 = arith.divf %212, %213 : vector<16x128xf32>
    %215 = arith.mulf %209, %214 : vector<16x128xf32>
    %216 = arith.truncf %215 : vector<16x128xf32> to vector<16x128xbf16>
    %c0_74 = arith.constant 0 : index
    %c0_75 = arith.constant 0 : index
    %c0_76 = arith.constant 0 : index
    %217 = vector.load %arg14[%c0_74, %c0_75, %c0_76] : memref<1x128x128xbf16, #tpu.memory_space<vmem>>, vector<1x128x128xbf16>
    %218 = vector.shape_cast %217 : vector<1x128x128xbf16> to vector<128x128xbf16>
    %cst_77 = arith.constant dense<0.000000e+00> : vector<16x128xf32>
    %219 = tpu.matmul %216, %218, %cst_77 {dimension_numbers = #tpu.dot_dimension_numbers<[1], [0], [0], [1], [0, 0, 1, 1], [], []>} : vector<16x128xbf16>, vector<128x128xbf16>, vector<16x128xf32> -> vector<16x128xf32>
    %c0_78 = arith.constant 0 : index
    %c0_79 = arith.constant 0 : index
    %c0_80 = arith.constant 0 : index
    %220 = vector.load %arg15[%c0_78, %c0_79, %c0_80] : memref<1x1x128xf32, #tpu.memory_space<vmem>>, vector<1x1x128xf32>
    %221 = vector.shape_cast %220 : vector<1x1x128xf32> to vector<1x128xf32>
    %222 = vector.broadcast %221 : vector<1x128xf32> to vector<16x128xf32>
    %223 = arith.addf %219, %222 : vector<16x128xf32>
    %224 = arith.addf %223, %201 : vector<16x128xf32>
    %c0_81 = arith.constant 0 : index
    %c0_82 = arith.constant 0 : index
    %c0_83 = arith.constant 0 : index
    %225 = vector.load %arg16[%c0_81, %c0_82, %c0_83] : memref<1x1x128xf32, #tpu.memory_space<vmem>>, vector<1x1x128xf32>
    %226 = vector.shape_cast %225 : vector<1x1x128xf32> to vector<1x128xf32>
    %c0_84 = arith.constant 0 : index
    %c0_85 = arith.constant 0 : index
    %c0_86 = arith.constant 0 : index
    %227 = vector.load %arg17[%c0_84, %c0_85, %c0_86] : memref<1x1x128xf32, #tpu.memory_space<vmem>>, vector<1x1x128xf32>
    %228 = vector.shape_cast %227 : vector<1x1x128xf32> to vector<1x128xf32>
    %cst_87 = arith.constant dense<0.000000e+00> : vector<16xf32>
    %229 = vector.multi_reduction <add>, %224, %cst_87 [1] : vector<16x128xf32> to vector<16xf32>
    %230 = vector.shape_cast %229 : vector<16xf32> to vector<16x1xf32>
    %cst_88 = arith.constant 1.280000e+02 : f32
    %231 = vector.broadcast %cst_88 : f32 to vector<16x1xf32>
    %232 = arith.divf %230, %231 : vector<16x1xf32>
    %233 = vector.broadcast %232 : vector<16x1xf32> to vector<16x128xf32>
    %234 = arith.subf %224, %233 : vector<16x128xf32>
    %235 = arith.mulf %234, %234 : vector<16x128xf32>
    %cst_89 = arith.constant dense<0.000000e+00> : vector<16xf32>
    %236 = vector.multi_reduction <add>, %235, %cst_89 [1] : vector<16x128xf32> to vector<16xf32>
    %237 = vector.shape_cast %236 : vector<16xf32> to vector<16x1xf32>
    %cst_90 = arith.constant 1.280000e+02 : f32
    %238 = vector.broadcast %cst_90 : f32 to vector<16x1xf32>
    %239 = arith.divf %237, %238 : vector<16x1xf32>
    %cst_91 = arith.constant 9.99999974E-6 : f32
    %240 = vector.broadcast %cst_91 : f32 to vector<16x1xf32>
    %241 = arith.addf %239, %240 : vector<16x1xf32>
    %242 = math.rsqrt %241 : vector<16x1xf32>
    %243 = vector.broadcast %242 : vector<16x1xf32> to vector<16x128xf32>
    %244 = arith.mulf %234, %243 : vector<16x128xf32>
    %245 = vector.broadcast %226 : vector<1x128xf32> to vector<16x128xf32>
    %246 = arith.mulf %244, %245 : vector<16x128xf32>
    %247 = vector.broadcast %228 : vector<1x128xf32> to vector<16x128xf32>
    %248 = arith.addf %246, %247 : vector<16x128xf32>
    %c0_92 = arith.constant 0 : index
    %c0_93 = arith.constant 0 : index
    %249 = vector.load %arg21[%c0_92, %c0_93] : memref<16x128xf32, #tpu.memory_space<vmem>>, vector<16x128xf32>
    tpu.vector_store %arg21[%c0_92, %c0_93], %248 {strides = array<i32>} : memref<16x128xf32, #tpu.memory_space<vmem>>, vector<16x128xf32>,
    %c1_i32 = arith.constant 1 : i32
    %250 = arith.cmpi eq, %arg1, %c1_i32 : i32
    %251 = arith.extui %250 : i1 to i32
    %c0_i32_94 = arith.constant 0 : i32
    %252 = arith.cmpi ne, %251, %c0_i32_94 : i32
    scf.if %252 {
      %253 = arith.truncf %248 : vector<16x128xf32> to vector<16x128xbf16>
      %c0_95 = arith.constant 0 : index
      %c0_96 = arith.constant 0 : index
      %254 = vector.load %arg18[%c0_95, %c0_96] : memref<128x128xbf16, #tpu.memory_space<vmem>>, vector<128x128xbf16>
      %cst_97 = arith.constant dense<0.000000e+00> : vector<16x128xf32>
      %255 = tpu.matmul %253, %254, %cst_97 {dimension_numbers = #tpu.dot_dimension_numbers<[1], [0], [0], [1], [0, 0, 1, 1], [], []>} : vector<16x128xbf16>, vector<128x128xbf16>, vector<16x128xf32> -> vector<16x128xf32>
      %c0_98 = arith.constant 0 : index
      %c0_99 = arith.constant 0 : index
      %256 = vector.load %arg19[%c0_98, %c0_99] : memref<1x128xf32, #tpu.memory_space<vmem>>, vector<1x128xf32>
      %257 = vector.broadcast %256 : vector<1x128xf32> to vector<16x128xf32>
      %258 = arith.addf %255, %257 : vector<16x128xf32>
      %c0_100 = arith.constant 0 : index
      %c0_101 = arith.constant 0 : index
      %259 = vector.load %arg2[%c0_100, %c0_101] : memref<16x128xf32, #tpu.memory_space<vmem>>, vector<16x128xf32>
      %260 = arith.addf %258, %259 : vector<16x128xf32>
      %c0_102 = arith.constant 0 : index
      %c0_103 = arith.constant 0 : index
      %261 = vector.load %arg20[%c0_102, %c0_103] : memref<16x128xf32, #tpu.memory_space<vmem>>, vector<16x128xf32>
      tpu.vector_store %arg20[%c0_102, %c0_103], %260 {strides = array<i32>} : memref<16x128xf32, #tpu.memory_space<vmem>>, vector<16x128xf32>,
    } else {
    }
    return
  }
  func.func @transform_0(%arg0: i32, %arg1: i32) -> (i32, i32) {
    %c0_i32 = arith.constant 0 : i32
    %c0_i32_0 = arith.constant 0 : i32
    return %arg0, %c0_i32 : i32, i32
  }
  func.func @transform_1(%arg0: i32, %arg1: i32) -> (i32, i32) {
    %c0_i32 = arith.constant 0 : i32
    %c0_i32_0 = arith.constant 0 : i32
    return %arg0, %c0_i32 : i32, i32
  }
  func.func @transform_2(%arg0: i32, %arg1: i32) -> (i32, i32) {
    %c0_i32 = arith.constant 0 : i32
    %c0_i32_0 = arith.constant 0 : i32
    %c0_i32_1 = arith.constant 0 : i32
    return %c0_i32, %c0_i32_0 : i32, i32
  }
  func.func @transform_3(%arg0: i32, %arg1: i32) -> (i32, i32) {
    %c0_i32 = arith.constant 0 : i32
    %c0_i32_0 = arith.constant 0 : i32
    %c0_i32_1 = arith.constant 0 : i32
    return %c0_i32, %c0_i32_0 : i32, i32
  }
  func.func @transform_4(%arg0: i32, %arg1: i32) -> (i32, i32) {
    %c0_i32 = arith.constant 0 : i32
    %c0_i32_0 = arith.constant 0 : i32
    %c0_i32_1 = arith.constant 0 : i32
    return %c0_i32, %c0_i32_0 : i32, i32
  }
  func.func @transform_5(%arg0: i32, %arg1: i32) -> (i32, i32, i32) {
    %c0_i32 = arith.constant 0 : i32
    %c0_i32_0 = arith.constant 0 : i32
    %c0_i32_1 = arith.constant 0 : i32
    return %arg1, %c0_i32, %c0_i32_0 : i32, i32, i32
  }
  func.func @transform_6(%arg0: i32, %arg1: i32) -> (i32, i32, i32) {
    %c0_i32 = arith.constant 0 : i32
    %c0_i32_0 = arith.constant 0 : i32
    %c0_i32_1 = arith.constant 0 : i32
    return %arg1, %c0_i32, %c0_i32_0 : i32, i32, i32
  }
  func.func @transform_7(%arg0: i32, %arg1: i32) -> (i32, i32, i32) {
    %c0_i32 = arith.constant 0 : i32
    %c0_i32_0 = arith.constant 0 : i32
    %c0_i32_1 = arith.constant 0 : i32
    return %arg1, %c0_i32, %c0_i32_0 : i32, i32, i32
  }
  func.func @transform_8(%arg0: i32, %arg1: i32) -> (i32, i32, i32) {
    %c0_i32 = arith.constant 0 : i32
    %c0_i32_0 = arith.constant 0 : i32
    %c0_i32_1 = arith.constant 0 : i32
    return %arg1, %c0_i32, %c0_i32_0 : i32, i32, i32
  }
  func.func @transform_9(%arg0: i32, %arg1: i32) -> (i32, i32, i32) {
    %c0_i32 = arith.constant 0 : i32
    %c0_i32_0 = arith.constant 0 : i32
    %c0_i32_1 = arith.constant 0 : i32
    return %arg1, %c0_i32, %c0_i32_0 : i32, i32, i32
  }
  func.func @transform_10(%arg0: i32, %arg1: i32) -> (i32, i32, i32) {
    %c0_i32 = arith.constant 0 : i32
    %c0_i32_0 = arith.constant 0 : i32
    %c0_i32_1 = arith.constant 0 : i32
    return %arg1, %c0_i32, %c0_i32_0 : i32, i32, i32
  }
  func.func @transform_11(%arg0: i32, %arg1: i32) -> (i32, i32, i32) {
    %c0_i32 = arith.constant 0 : i32
    %c0_i32_0 = arith.constant 0 : i32
    %c0_i32_1 = arith.constant 0 : i32
    return %arg1, %c0_i32, %c0_i32_0 : i32, i32, i32
  }
  func.func @transform_12(%arg0: i32, %arg1: i32) -> (i32, i32, i32) {
    %c0_i32 = arith.constant 0 : i32
    %c0_i32_0 = arith.constant 0 : i32
    %c0_i32_1 = arith.constant 0 : i32
    return %arg1, %c0_i32, %c0_i32_0 : i32, i32, i32
  }
  func.func @transform_13(%arg0: i32, %arg1: i32) -> (i32, i32, i32) {
    %c0_i32 = arith.constant 0 : i32
    %c0_i32_0 = arith.constant 0 : i32
    %c0_i32_1 = arith.constant 0 : i32
    return %arg1, %c0_i32, %c0_i32_0 : i32, i32, i32
  }
  func.func @transform_14(%arg0: i32, %arg1: i32) -> (i32, i32, i32) {
    %c0_i32 = arith.constant 0 : i32
    %c0_i32_0 = arith.constant 0 : i32
    %c0_i32_1 = arith.constant 0 : i32
    return %arg1, %c0_i32, %c0_i32_0 : i32, i32, i32
  }
  func.func @transform_15(%arg0: i32, %arg1: i32) -> (i32, i32, i32) {
    %c0_i32 = arith.constant 0 : i32
    %c0_i32_0 = arith.constant 0 : i32
    %c0_i32_1 = arith.constant 0 : i32
    return %arg1, %c0_i32, %c0_i32_0 : i32, i32, i32
  }
  func.func @transform_16(%arg0: i32, %arg1: i32) -> (i32, i32) {
    %c0_i32 = arith.constant 0 : i32
    %c0_i32_0 = arith.constant 0 : i32
    %c0_i32_1 = arith.constant 0 : i32
    return %c0_i32, %c0_i32_0 : i32, i32
  }
  func.func @transform_17(%arg0: i32, %arg1: i32) -> (i32, i32) {
    %c0_i32 = arith.constant 0 : i32
    %c0_i32_0 = arith.constant 0 : i32
    %c0_i32_1 = arith.constant 0 : i32
    return %c0_i32, %c0_i32_0 : i32, i32
  }
  func.func @transform_18(%arg0: i32, %arg1: i32) -> (i32, i32) {
    %c0_i32 = arith.constant 0 : i32
    %c0_i32_0 = arith.constant 0 : i32
    return %arg0, %c0_i32 : i32, i32
  }
}

</mosaic_0001>

<bundles_post_ra>
// kernel: tpu_custom_call.1
= control target key start
LH: loop header
LB: loop body
LE: loop exit
PB: predicated region body
PF: predicated region fallthrough
CT: control target
= control target key end

     0   :  { %s5949_s0 = inlined_call_operand.vmem [shape: f32[32,128], index: 0, kind: input, shape index: {}]   ;;  %s5950_s1 = inlined_call_operand.vmem [shape: f32[32,1], index: 1, kind: input, shape index: {}]   ;;  %s5951_s2 = inlined_call_operand.hbm [shape: f32[16,128], index: 2, kind: input, shape index: {}]   ;;  %s5952_s3 = inlined_call_operand.hbm [shape: bf16[128,128], index: 3, kind: input, shape index: {}]   ;;  %s5953_s4 = inlined_call_operand.hbm [shape: f32[1,128], index: 4, kind: input, shape index: {}]   ;;  %s5954_s5 = inlined_call_operand.hbm [shape: bf16[2,128,384], index: 5, kind: input, shape index: {}]   ;;  %s5955_s6 = inlined_call_operand.hbm [shape: bf16[2,128,128], index: 6, kind: input, shape index: {}]   ;;  %s5956_s7 = inlined_call_operand.vmem [shape: f32[2,1,128], index: 7, kind: input, shape index: {}]   ;;  %s5957_s8 = inlined_call_operand.vmem [shape: f32[2,1,128], index: 8, kind: input, shape index: {}]   ;;  %s5958_s9 = inlined_call_operand.vmem [shape: f32[2,1,128], index: 9, kind: input, shape index: {}]   ;;  %s5959_s10 = inlined_call_operand.hbm [shape: bf16[2,128,128], index: 10, kind: input, shape index: {}]   ;;  %s5960_s11 = inlined_call_operand.vmem [shape: f32[2,1,128], index: 11, kind: input, shape index: {}]   ;;  %s5961_s12 = inlined_call_operand.hbm [shape: bf16[2,128,128], index: 12, kind: input, shape index: {}]   ;;  %s5962_s13 = inlined_call_operand.vmem [shape: f32[2,1,128], index: 13, kind: input, shape index: {}]   ;;  %s5963_s14 = inlined_call_operand.vmem [shape: f32[2,1,128], index: 14, kind: input, shape index: {}]   ;;  %s5964_s15 = inlined_call_operand.vmem [shape: f32[2,1,128], index: 15, kind: input, shape index: {}]   ;;  %s5965_s16 = inlined_call_operand.hbm [shape: bf16[128,128], index: 16, kind: input, shape index: {}]   ;;  %s5966_s17 = inlined_call_operand.vmem [shape: f32[1,128], index: 17, kind: input, shape index: {}]   ;;  %s5967_s18 = inlined_call_operand.hbm [shape: f32[32,128], index: 18, kind: output, shape index: {}]  }
   0x1   :  { %5995 = sst [smem:[#allocation41_spill]] %s5949_s0 }
   0x2   :  { %5996 = sst [smem:[#allocation42_spill]] %s5950_s1 }
   0x3   :  { %5997 = sst [smem:[#allocation43_spill]] %s5951_s2 }
   0x4   :  { %5998 = sst [smem:[#allocation44_spill]] %s5952_s3 }
   0x5   :  { %5999 = sst [smem:[#allocation45_spill]] %s5953_s4 }
   0x6   :  { %6000 = sst [smem:[#allocation46_spill]] %s5954_s5 }
   0x7   :  { %6001 = sst [smem:[#allocation47_spill]] %s5955_s6 }
   0x8   :  { %6002 = sst [smem:[#allocation48_spill]] %s5956_s7 }
   0x9   :  { %6003 = sst [smem:[#allocation49_spill]] %s5957_s8 }
   0xa   :  { %6004 = sst [smem:[#allocation50_spill]] %s5958_s9 }
   0xb   :  { %6005 = sst [smem:[#allocation51_spill]] %s5959_s10 }
   0xc   :  { %6006 = sst [smem:[#allocation52_spill]] %s5960_s11 }
   0xd   :  { %6007 = sst [smem:[#allocation53_spill]] %s5961_s12 }
   0xe   :  { %6008 = sst [smem:[#allocation54_spill]] %s5962_s13 }
   0xf   :  { %6009 = sst [smem:[#allocation55_spill]] %s5963_s14 }
  0x10   :  { %6010 = sst [smem:[#allocation56_spill]] %s5964_s15 }
  0x11   :  { %6011 = sst [smem:[#allocation57_spill]] %s5965_s16 }
  0x12   :  { %6012 = sst [smem:[#allocation58_spill]] %s5966_s17 }
  0x13   :  { %6013 = sst [smem:[#allocation59_spill]] %s5967_s18 }
  0x14   :  { %23 = vsyncpa [#allocation5], 0 }
  0x15   :  { %24 = vsyncpa [#allocation8], 0 }
  0x16   :  { %25 = vsyncpa [#allocation11], 0 }
  0x17   :  { %27 = vsyncpa [#allocation11 + $0x1], 0 }
  0x18   :  { %28 = vsyncpa [#allocation14], 0 }
  0x19   :  { %30 = vsyncpa [#allocation14 + $0x1], 0 }
  0x1a   :  { %31 = vsyncpa [#allocation17], 0 }
  0x1b   :  { %32 = vsyncpa [#allocation6], 0 }
  0x1c   :  { %34 = vsyncpa [#allocation6 + $0x1], 0  ;;  %s5170_s27 = smov 0   ;;  %s5172_s28 = smov 0  }
  0x1d   :  { %s5174_s29 = smov 0   ;;  %s5176_s30 = smov 0  }
  0x1e   :  { %s5178_s0 = smov 0   ;;  %s5180_s19 = smov 0  }
  0x1f   :  { %s5182_s1 = smov 0   ;;  %s5184_s20 = smov 0  }
  0x20   :  { %s5186_s21 = smov 0   ;;  %s5188_s22 = smov 0  }
  0x21   :  { %s5190_s2 = smov 0  }
  0x22 LB: > { %6014 = sst [smem:[#allocation25_spill]] %s5001_s27  ;;  %s5224_s23 = sadd.s32 4294967295, %s5041_s2   ;;  %s5041_s2 = sphi %s5190_s2, %s40_s2   ;;  %s5037_s22 = sphi %s5188_s22, %s6098_s22   ;;  %s5033_s21 = sphi %s5186_s21, %s6097_s21   ;;  %s5029_s20 = sphi %s5184_s20, %s6096_s20   ;;  %s5025_s1 = sphi %s5182_s1, %s6095_s1   ;;  %s5021_s19 = sphi %s5180_s19, %s6094_s19   ;;  %s5017_s0 = sphi %s5178_s0, %s6093_s0   ;;  %s5013_s30 = sphi %s5176_s30, %s6092_s30   ;;  %s5009_s29 = sphi %s5174_s29, %s6091_s29   ;;  %s5005_s28 = sphi %s5172_s28, %s6090_s28   ;;  %s5001_s27 = sphi %s5170_s27, %s6089_s27  }
  0x23   : > { %6015 = sst [smem:[#allocation26_spill]] %s5005_s28  ;;  %s3836_s24 = sadd.s32 4294967294, %s5041_s2  }
  0x24   : > { %6016 = sst [smem:[#allocation27_spill]] %s5009_s29  ;;  %p187_p0 = scmp.ne.s32.totalorder %s5017_s0, %s5013_s30 }
  0x25   : > { %6017 = sst [smem:[#allocation28_spill]] %s5017_s0  ;;  %p5981_p1 = scmp.eq.s32.totalorder %s5224_s23, 0 }
  0x26   : > { %6018 = sst [smem:[#allocation29_spill]] %s5021_s19  ;;  %p512_p2 = scmp.ne.s32.totalorder %s5009_s29, %s5005_s28 }
  0x27   : > { %6019 = sst [smem:[#allocation30_spill]] %s5025_s1  ;;  %p5234_p3 = por %p5981_p1, %p187_p0 }
  0x28   : > { %6020 = sst [smem:[#allocation31_spill]] %s5029_s20  ;;  %p513_p4 = scmp.eq.s32.totalorder %s5224_s23, 3 }
  0x29   : > { %6021 = sst [smem:[#allocation32_spill]] %s5033_s21  ;;  %p518_p5 = scmp.ne.s32.totalorder %s5005_s28, %s5001_s27 }
  0x2a   : > { %6022 = sst [smem:[#allocation33_spill]] %s5037_s22  ;;  %p519_p6 = scmp.eq.s32.totalorder %s3836_s24, 3 }
  0x2b   : > { %6023 = sst [smem:[#allocation34_spill]] %s5041_s2  ;;  %p5241_p7 = por %p513_p4, %p512_p2 }
  0x2c   : > { %s6024_s26 = scalar_select %p5234_p3, 1, 0 }
  0x2d   : > { %s6025_s18 = scalar_select %p5241_p7, 1, 0 }
  0x2e   : > { %p3837_p8 = scmp.ge.s32.totalorder %s5041_s2, 1  ;;  %p5246_p9 = por %p519_p6, %p518_p5 }
  0x2f   : > { %6026 = sst [smem:[#allocation35_spill]] %s6025_s18  ;;  %p526_p10 = scmp.lt.s32.totalorder %s5041_s2, 5 }
  0x30   : > { %s6027_s17 = scalar_select %p5246_p9, 1, 0 }
  0x31   : > { %p5251_p11 = pnand %p3837_p8, %p526_p10  ;;  %s5043_s25 = smov [#allocation7]  }
  0x32   : > { %6028 = sst [smem:[#allocation36_spill]] %s6027_s17  ;;  %s551_s15 = sshll.u32 %s5043_s25, 4  ;;  %s552_s15 = int_to_ptr.vmem [resolvable:$true] %s551_s15 }
  0x33   : > { %s6029_s30 = scalar_select %p5251_p11, 1, 0 }
  0x34   : > { %p4379_p12 = pneg %p5251_p11  ;;  %s4700_s17 = scalar_lea.vmem %s552_s15, 1024 }
  0x35   : > { %p4701_p2 = scmp.ne.s32.totalorder %s552_s15, %s4700_s17  ;;  %p4708_p6 = scmp.lt.s32.totalorder %s552_s15, %s552_s15 }
  0x36   : > { %p5259_p13 = pnand %p4379_p12, %p5981_p1  ;;  %p4709_p8 = scmp.lt.s32.totalorder %s4700_s17, %s4700_s17 }
  0x38   : > { %p4691_p0 = pneg %p5259_p13  ;;  %p4710_p10 = por %p4709_p8, %p4708_p6 }
  0x3a   : > { %p4703_p4 = pnand %p4701_p2, %p4691_p0 }
  0x3c   : > { %p4704_p5 = pneg %p4703_p4 }
  0x3e   : > { %p4711_p9 = pnand %p4710_p10, %p4704_p5 }
  0x40   : > { %4714 = shalt.err (!%p4711_p9)
}
  0x41   : > { %s5973_s25 = smov 64   ;;  %s5975_s27 = smov 4  }
  0x42   : > { %s6031_s3 = sld [smem:[#allocation44_spill]]  ;;  %s49_s14 = sadd.s32 1, %s5033_s21 }
  0x43   : > { %p50_p9 = scmp.ge.s32.totalorder %s49_s14, 2  ;;  %s52_s13 = sadd.s32 1, %s5037_s22 }
  0x44   : > { %s174_s11 = sadd.s32 1, %s5021_s19  ;;  %p181_p12 = scmp.ne.s32.totalorder %s5021_s19, %s5017_s0 }
  0x45   : > { %s6100_s14 = smov (%p50_p9, %s49_s14), 0  ;;  %s6102_s13 = smov (!%p50_p9, %s52_s13), %s5037_s22 }
  0x46   : > { %6032 = sst [smem:[#allocation37_spill]] %s6100_s14  ;;  %s171_s9 = ssub.s32 %s5033_s21, %s6100_s14 }
  0x47   : > { %p182_p2 = scmp.eq.s32.totalorder %s5041_s2, 0  ;;  %p54_p4 = scmp.ge.s32.totalorder %s6102_s13, 2 }
  0x48   : > { %4385 = dma.hbm_to_vmem [thread:$0]  (!%p5259_p13), %s6031_s3, 1024, %s552_s15, [#allocation8], %s5973_s25, %s5973_s25, %s5975_s27  }
  0x49   : > { %p172_p5 = scmp.eq.s32.totalorder %s171_s9, 0  ;;  %p183_p6 = por %p182_p2, %p181_p12 }
  0x4a   : > { %p4413_p8 = scmp.lt.s32.totalorder %s5041_s2, 4  ;;  %s6104_s13 = smov (%p54_p4, %s6102_s13), 0 }
  0x4b   : > { %6033 = sst [smem:[#allocation38_spill]] %s6104_s13  ;;  %s499_s18 = ssub.s32 %s5037_s22, %s6104_s13 }
  0x4c   : > { %s5291_s15 = scalar_select %p172_p5, %s5021_s19, %s174_s11  }
  0x4d   : > { %s5982_s17 = sand.u32 1, %s5041_s2   ;;  %p500_p10 = scmp.eq.s32.totalorder %s499_s18, 0 }
  0x4e   : > { %6034 = sst [smem:[#allocation39_spill]] %s5291_s15  ;;  %s612_s25 = sand.u32 1, %s5021_s19  }
  0x4f   : > { %s4351_s27 = smul.u32 3072, %s5033_s21  ;;  %s6035_s3 = sadd.s32 1, %s5009_s29 }
  0x50   : > { %s5301_s8 = scalar_select %p500_p10, %s5009_s29, %s6035_s3  }
  0x51   : > { %s4350_s14 = smul.u32 192, %s612_s25  ;;  %s6037_s5 = sld [smem:[#allocation46_spill]] }
  0x52   : > { %6036 = sst [smem:[#allocation40_spill]] %s5301_s8  ;;  %p5306_p9 = pnand %p4413_p8, %p183_p6 }
  0x53   : > { %s614_s11 = scalar_lea.vmem [#allocation10], %s4350_s14  ;;  %s5310_s18 = sshll.u32 %s612_s25, 6 }
  0x54   : > { %s621_s13 = sshll.u32 %s614_s11, 4  ;;  %s5314_s22 = scalar_lea.sflag [#allocation11], %s5982_s17  ;;  %s622_s13 = int_to_ptr.vmem [resolvable:$true] %s621_s13 }
  0x55   : > { %p5984_p12 = pneg %p5306_p9  ;;  %s4728_s3 = scalar_lea.vmem %s622_s13, 3072 }
  0x56   : > { %p4729_p2 = scmp.ne.s32.totalorder %s622_s13, %s4728_s3  ;;  %s5046_s7 = smov [#allocation10]  }
  0x57   : > { %s620_s9 = scalar_lea.hbm %s6037_s5, %s4351_s27  ;;  %s4733_s27 = sshll.u32 %s5046_s7, 4  ;;  %s4734_s27 = int_to_ptr.vmem [resolvable:$false] %s4733_s27 }
  0x58   : > { %p4731_p4 = pnand %p4729_p2, %p5984_p12  ;;  %s4735_s1 = scalar_lea.vmem %s4734_s27, 6144 }
  0x59   : > { %p4736_p6 = scmp.lt.s32.totalorder %s622_s13, %s4734_s27  ;;  %p4737_p8 = scmp.lt.s32.totalorder %s4735_s1, %s4728_s3 }
  0x5a   : > { %p4732_p5 = pneg %p4731_p4 }
  0x5b   : > { %p4738_p10 = por %p4737_p8, %p4736_p6 }
  0x5d   : > { %p4739_p1 = pnand %p4738_p10, %p4732_p5 }
  0x5f   : > { %4742 = shalt.err (!%p4739_p1)
}
  0x60   : > { %s5047_s14 = smov 192   ;;  %s5048_s25 = smov 12  }
  0x61   : > { %4395 = dma.hbm_to_vmem [thread:$0]  (!%p5306_p9), %s620_s9, 3072, %s622_s13, %s5314_s22, %s5047_s14, %s5047_s14, %s5048_s25  }
  0x62   : > { %s5325_s11 = sshll.u32 %s5033_s21, 10  ;;  %s6039_s10 = sld [smem:[#allocation51_spill]] }
  0x63   : > { %s674_s27 = scalar_lea.vmem [#allocation13], %s5310_s18  ;;  %s6040_s5 = sand.u32 1, %s5041_s2  }
  0x64   : > { %s681_s1 = sshll.u32 %s674_s27, 4  ;;  %s5334_s15 = scalar_lea.sflag [#allocation14], %s6040_s5  ;;  %s682_s1 = int_to_ptr.vmem [resolvable:$true] %s681_s1 }
  0x65   : > { %s4756_s19 = scalar_lea.vmem %s682_s1, 1024  ;;  %s5049_s13 = smov [#allocation13]  }
  0x66   : > { %p4757_p1 = scmp.ne.s32.totalorder %s682_s1, %s4756_s19  ;;  %s4761_s9 = sshll.u32 %s5049_s13, 4  ;;  %s4762_s9 = int_to_ptr.vmem [resolvable:$false] %s4761_s9 }
  0x67   : > { %s4763_s14 = scalar_lea.vmem %s4762_s9, 2048  ;;  %p4764_p5 = scmp.lt.s32.totalorder %s682_s1, %s4762_s9 }
  0x68   : > { %s680_s3 = scalar_lea.hbm %s6039_s10, %s5325_s11  ;;  %p4759_p2 = pnand %p4757_p1, %p5984_p12 }
  0x69   : > { %p4765_p6 = scmp.lt.s32.totalorder %s4763_s14, %s4756_s19 }
  0x6a   : > { %p4760_p4 = pneg %p4759_p2 }
  0x6b   : > { %p4766_p8 = por %p4765_p6, %p4764_p5 }
  0x6d   : > { %p4767_p10 = pnand %p4766_p8, %p4760_p4 }
  0x6f   : > { %4770 = shalt.err (!%p4767_p10)
}
  0x70   : > { %s6041_s17 = smov 4   ;;  %s6042_s5 = smov 64  }
  0x71   : > { %4401 = dma.hbm_to_vmem [thread:$0]  (!%p5306_p9), %s680_s3, 1024, %s682_s1, %s5334_s15, %s6042_s5, %s6042_s5, %s6041_s17  }
  0x72   : > { %s5050_s25 = smov [#allocation4]  }
  0x73   : > { %s538_s7 = sshll.u32 %s5050_s25, 4  ;;  %s539_s7 = int_to_ptr.vmem [resolvable:$true] %s538_s7 }
  0x74   : > { %s4782_s27 = scalar_lea.vmem %s539_s7, 256  ;;  %p4790_p5 = scmp.lt.s32.totalorder %s539_s7, %s539_s7 }
  0x75   : > { %p4783_p1 = scmp.ne.s32.totalorder %s539_s7, %s4782_s27  ;;  %p4791_p4 = scmp.lt.s32.totalorder %s4782_s27, %s4782_s27 }
  0x77   : > { %p4785_p2 = pnand %p4783_p1, %p4691_p0  ;;  %p4792_p6 = por %p4791_p4, %p4790_p5 }
  0x79   : > { %p4786_p12 = pneg %p4785_p2 }
  0x7b   : > { %p4793_p8 = pnand %p4792_p6, %p4786_p12 }
  0x7d   : > { %4796 = shalt.err (!%p4793_p8)
}
  0x7e   : > { %s5051_s19 = smov 128   ;;  %s5052_s13 = smov 8  }
  0x7f   : > { %s6043_s9 = sld [smem:[#allocation43_spill]]  ;;  %s5053_s14 = smov [#allocation9]  }
  0x80   : > { %s565_s25 = sshll.u32 %s5053_s14, 4  ;;  %s5054_s10 = smov [#allocation16]   ;;  %s566_s25 = int_to_ptr.vmem [resolvable:$true] %s565_s25 }
  0x81   : > { %s575_s21 = sshll.u32 %s5054_s10, 4  ;;  %s4808_s8 = scalar_lea.vmem %s566_s25, 16  ;;  %s576_s21 = int_to_ptr.vmem [resolvable:$true] %s575_s21 }
  0x82   : > { %p4809_p10 = scmp.ne.s32.totalorder %s566_s25, %s4808_s8  ;;  %s4815_s27 = scalar_lea.vmem %s566_s25, 32 }
  0x83   : > { %p4816_p2 = scmp.lt.s32.totalorder %s566_s25, %s566_s25  ;;  %p4817_p5 = scmp.lt.s32.totalorder %s4815_s27, %s4808_s8 }
  0x84   : > { %p4811_p12 = pnand %p4809_p10, %p4691_p0 }
  0x85   : > { %4382 = dma.hbm_to_vmem [thread:$0]  (!%p5259_p13), %s6043_s9, 256, %s539_s7, [#allocation5], %s5051_s19, %s5051_s19, %s5052_s13  }
  0x86   : > { %p4812_p1 = pneg %p4811_p12  ;;  %p4818_p4 = por %p4817_p5, %p4816_p2 }
  0x88   : > { %p4819_p6 = pnand %p4818_p4, %p4812_p1 }
  0x8a   : > { %4822 = shalt.err (!%p4819_p6)
}
  0x8b   : > { %s6044_s4 = sld [smem:[#allocation45_spill]]  ;;  %s4834_s10 = scalar_lea.vmem %s576_s21, 1024 }
  0x8c   : > { %p4835_p8 = scmp.ne.s32.totalorder %s576_s21, %s4834_s10  ;;  %p4842_p7 = scmp.lt.s32.totalorder %s576_s21, %s576_s21 }
  0x8d   : > { %p4843_p3 = scmp.lt.s32.totalorder %s4834_s10, %s4834_s10 }
  0x8e   : > { %p4837_p10 = pnand %p4835_p8, %p4691_p0 }
  0x8f   : > { %p4844_p11 = por %p4843_p3, %p4842_p7 }
  0x90   : > { %p4838_p12 = pneg %p4837_p10 }
  0x91   : > { %4388 = dma.hbm_to_vmem [thread:$0]  (!%p5259_p13), %s6044_s4, 16, %s566_s25, [#allocation8]  }
  0x92   : > { %p4845_p2 = pnand %p4844_p11, %p4838_p12 }
  0x94   : > { %4848 = shalt.err (!%p4845_p2)
}
  0x95   : > { %s6045_s16 = sld [smem:[#allocation57_spill]]  ;;  %s635_s14 = scalar_lea.vmem [#allocation12], %s5310_s18 }
  0x96   : > { %s6046_s6 = sld [smem:[#allocation47_spill]]  ;;  %s642_s25 = sshll.u32 %s635_s14, 4  ;;  %s643_s25 = int_to_ptr.vmem [resolvable:$true] %s642_s25 }
  0x97   : > { %s4862_s27 = scalar_lea.vmem %s643_s25, 1024  ;;  %p6047_p7 = pneg %p5306_p9 }
  0x98   : > { %p4863_p3 = scmp.ne.s32.totalorder %s643_s25, %s4862_s27  ;;  %s5055_s24 = smov [#allocation12]  }
  0x99   : > { %s4867_s7 = sshll.u32 %s5055_s24, 4  ;;  %s4868_s7 = int_to_ptr.vmem [resolvable:$false] %s4867_s7 }
  0x9a   : > { %p4865_p11 = pnand %p4863_p3, %p6047_p7  ;;  %s4869_s19 = scalar_lea.vmem %s4868_s7, 2048 }
  0x9b   : > { %4391 = dma.hbm_to_vmem [thread:$0]  (!%p5259_p13), %s6045_s16, 1024, %s576_s21, [#allocation17], %s6042_s5, %s6042_s5, %s6041_s17  }
  0x9c   : > { %s641_s9 = scalar_lea.hbm %s6046_s6, %s5325_s11  ;;  %p4866_p0 = pneg %p4865_p11 }
  0x9d   : > { %p4870_p1 = scmp.lt.s32.totalorder %s643_s25, %s4868_s7  ;;  %p4871_p5 = scmp.lt.s32.totalorder %s4869_s19, %s4862_s27 }
  0x9f   : > { %p4872_p13 = por %p4871_p5, %p4870_p1 }
  0xa1   : > { %p4873_p4 = pnand %p4872_p13, %p4866_p0 }
  0xa3   : > { %4876 = shalt.err (!%p4873_p4)
}
  0xa4   : > { %4398 = dma.hbm_to_vmem [thread:$0]  (!%p5306_p9), %s641_s9, 1024, %s643_s25, %s5314_s22, %s6042_s5, %s6042_s5, %s6041_s17  }
  0xa5   : > { %s6048_s12 = sld [smem:[#allocation53_spill]]  ;;  %s701_s13 = scalar_lea.vmem [#allocation15], %s5310_s18 }
  0xa6   : > { %s708_s3 = sshll.u32 %s701_s13, 4  ;;  %p6049_p8 = pmov %p6047_p7  ;;  %s709_s3 = int_to_ptr.vmem [resolvable:$true] %s708_s3 }
  0xa7   : > { %s4890_s1 = scalar_lea.vmem %s709_s3, 1024  ;;  %s5056_s14 = smov [#allocation15]  }
  0xa8   : > { %p4891_p6 = scmp.ne.s32.totalorder %s709_s3, %s4890_s1  ;;  %s4895_s27 = sshll.u32 %s5056_s14, 4  ;;  %s4896_s27 = int_to_ptr.vmem [resolvable:$false] %s4895_s27 }
  0xa9   : > { %s4897_s24 = scalar_lea.vmem %s4896_s27, 2048  ;;  %p4898_p2 = scmp.lt.s32.totalorder %s709_s3, %s4896_s27 }
  0xaa   : > { %p4893_p10 = pnand %p4891_p6, %p6049_p8  ;;  %p4899_p3 = scmp.lt.s32.totalorder %s4897_s24, %s4890_s1 }
  0xab   : > { %s707_s8 = scalar_lea.hbm %s6048_s12, %s5325_s11 }
  0xac   : > { %p4894_p12 = pneg %p4893_p10  ;;  %p4900_p7 = por %p4899_p3, %p4898_p2 }
  0xae   : > { %p4901_p11 = pnand %p4900_p7, %p4894_p12 }
  0xb0   : > { %4904 = shalt.err (!%p4901_p11)
}
  0xb1   : > { %4404 = dma.hbm_to_vmem [thread:$0]  (!%p5306_p9), %s707_s8, 1024, %s709_s3, %s5334_s15, %s6042_s5, %s6042_s5, %s6041_s17  }
  0xb2   : > { %p6050_p0 = scmp.ne.s32.totalorder %s6029_s30, 0 }
  0xb3   : > { %p6051_p1 = scmp.eq.s32.totalorder (!%p6050_p0), %s5224_s23, 0 }
  0xb4   : > { %738 = sbr.rel (%p6050_p0) target bundleno = 6269 (0x187d), region = 92 }
  0xb9   : > { %4976 = dma.done.wait (%p6051_p1), [#allocation5], 256   ;;  %p6052_p5 = pmov %p6051_p1 }
  0xba   : > { %p6053_p13 = pmov %p6051_p1 }
  0xbb   : > { %4978 = vsyncadd (%p6052_p5), [#allocation5], 4294967040 }
  0xbc   : > { %4980 = dma.done.wait (%p6053_p13), [#allocation8], 1040   ;;  %p6054_p4 = pmov %p6051_p1 }
  0xbd   : > { %s752_s20 = sand.u32 1, %s5224_s23   ;;  %s754_s22 = sand.u32 1, %s5017_s0  }
  0xbe   : > { %4982 = vsyncadd (%p6054_p4), [#allocation8], 4294966256  ;;  %s4352_s15 = smul.u32 192, %s754_s22  ;;  %s753_s30 = scalar_lea.sflag [#allocation11], %s752_s20 }
  0xbf   : > { %p6055_p9 = scmp.ne.s32.totalorder %s6024_s26, 0 }
  0xc0   : > { %s5412_s18 = scalar_lea.vmem [#allocation10], %s4352_s15 }
  0xc1   : > { %4984 = dma.done.wait (%p6055_p9), %s753_s30, 4096  }
  0xc2   : > { %4986 = vsyncadd (%p6055_p9), %s753_s30, 4294963200  ;;  %s3857_s11 = sshll.u32 %s754_s22, 6  ;;  %s771_s5 = scalar_lea.sflag [#allocation14], %s752_s20 }
  0xc3   : > { %s5418_s17 = scalar_lea.vmem [#allocation12], %s3857_s11  ;;  %s5420_s9 = scalar_lea.vmem [#allocation13], %s3857_s11 }
  0xc4   : > { %4988 = dma.done.wait (%p6055_p9), %s771_s5, 2048  }
  0xc5   : > { %4990 = vsyncadd (%p6055_p9), %s771_s5, 4294965248  ;;  %s5426_s25 = scalar_lea.vmem [#allocation15], %s3857_s11  ;;  %p6056_p6 = pmov %p6051_p1 }
  0xc6   : > { %p6057_p8 = pmov %p6051_p1 }
  0xc7   : > { %4992 = dma.done.wait (%p6056_p6), [#allocation17], 1024  }
  0xc8   : > { %4994 = vsyncadd (%p6057_p8), [#allocation17], 4294966272  ;;  %s6058_s7 = sld [smem:[#allocation31_spill]]  ;;  %s5989_s21 = sand.u32 1, %s5005_s28  }
  0xc9   : > { %s6059_s19 = sld [smem:[#allocation30_spill]]  ;;  %s3861_s8 = sshll.u32 %s5989_s21, 4 }
  0xca   : > { %s6060_s1 = sld [smem:[#allocation41_spill]] }
  0xcb   : > { %s6061_s20 = sld [smem:[#allocation42_spill]] }
  0xcc   : > { %s6063_s4 = sld [smem:[#allocation49_spill]] }
  0xcd   : > { %s6065_s3 = sld [smem:[#allocation52_spill]] }
  0xce   : > { %s3862_s10 = sshll.u32 %s6058_s7, 1  ;;  %s6066_s27 = sld [smem:[#allocation54_spill]] }
  0xcf   : > { %p887_p10 = scmp.lt.s32.totalorder %s3862_s10, 3  ;;  %p898_p12 = scmp.lt.s32.totalorder %s6059_s19, 1 }
  0xd0   : > { %s6067_s15 = sld [smem:[#allocation55_spill]]  ;;  %s5476_s7 = scalar_lea.vmem [#allocation18], %s3861_s8 }
  0xd1   : > { %s6106_s10 = smov (!%p887_p10, %s3862_s10), 3  ;;  %s6068_s21 = sld [smem:[#allocation56_spill]] }
  0xd2   : > { %s5438_s26 = scalar_select %p898_p12, %s6059_s19, 1 }
  0xd3   : > { %s3863_s23 = sshll.u32 %s6106_s10, 3  ;;  %s6064_s10 = sld [smem:[#allocation50_spill]] }
  0xd4   : > { %s5443_s14 = scalar_lea.vmem %s6060_s1, %s3863_s23  ;;  %s896_s22 = scalar_lea.vmem %s6061_s20, %s3863_s23 }
  0xd5   : > { %s903_s6 = scalar_lea.vmem %s6063_s4, %s5438_s26  ;;  %s909_s1 = scalar_lea.vmem %s6065_s3, %s5438_s26 }
  0xd6   : > { %s912_s23 = scalar_lea.vmem %s6066_s27, %s5438_s26  ;;  %s915_s30 = scalar_lea.vmem %s6067_s15, %s5438_s26 }
  0xd7   : > { %s918_s4 = scalar_lea.vmem %s6068_s21, %s5438_s26  ;;  %p3866_p2 = scmp.ne.s32.totalorder %s6059_s19, 0 }
  0xd9   : > { %s906_s0 = scalar_lea.vmem %s6064_s10, %s5438_s26  ;;  %924 = sbr.rel (%p3866_p2) target bundleno = 560 (0x230), region = 128 }
  0xde   : > { %v927_v0 = vld [vmem:[%s896_s22] sm:$0xff]  ;;  %v5057_v1 = vmov 0   ;;  %v5058_v2 = vmov 0.0   ;;  %v4535_v3 = vld [vmem:[#allocation7 + $0x38] sm:$0xff]   ;;  %vm5059_vm0 = vmmov 0   ;;  %v4537_v6 = vld [vmem:[#allocation7 + $0x28] sm:$0xff]  }
  0xdf   : > { %4534 = vset.pattern.permute.xlu0 %v5057_v1  ;;  %4118 = vmatprep.subr.bf16.mxu0 %v5058_v2  ;;  %v928_v4 = vld [vmem:[%s896_s22 + $0x8] sm:$0xff]  ;;  %v4536_v5 = vld [vmem:[#allocation7 + $0x30] sm:$0xff]   ;;  %v4538_v7 = vld [vmem:[#allocation7 + $0x20] sm:$0xff]  }
  0xe0   : > { %931 = vperm.xlu0 %4534, %v927_v0   ;;  %4119 = vmatpush3.bf16.msra.mxu0 %v4535_v3  ;;  %v4539_v8 = vld [vmem:[#allocation7 + $0x18] sm:$0xff]   ;;  %v4540_v9 = vld [vmem:[#allocation7 + $0x10] sm:$0xff]   ;;  %v4541_v10 = vld [vmem:[#allocation7 + $0x8] sm:$0xff]  }
  0xe1   : > { %4120 = vmatprep.subr.bf16.mxu0 %v5058_v2  ;;  %4134 = vmatprep.mubr.msk.bf16.mxu0 %vm5059_vm0, %v5058_v2  ;;  %v4542_v11 = vld [vmem:[#allocation7] sm:$0xff]   ;;  %v925_v13 = vld [vmem:[%s5443_s14] sm:$0xff]  ;;  %v926_v14 = vld [vmem:[%s5443_s14 + $0x8] sm:$0xff] }
  0xe2   : > { %v3867_v19 = vld [vmem:[#allocation9] ss:$0 sm:$0xff]  ;;  %v1056_v22 = vld [vmem:[#allocation4] sm:$0xff]  ;;  %v1057_v28 = vld [vmem:[#allocation4 + $0x8] sm:$0xff] }
  0xe4   : > { %936 = vperm.xlu0 %4534, %v928_v4   ;;  %4121 = vmatpush3.bf16.msra.mxu0 %v4536_v5 }
  0xe5   : > { %4122 = vmatprep.subr.bf16.mxu0 %v5058_v2 }
  0xe8   : > { %4123 = vmatpush3.bf16.msra.mxu0 %v4537_v6 }
  0xe9   : > { %4124 = vmatprep.subr.bf16.mxu0 %v5058_v2 }
  0xec   : > { %4125 = vmatpush3.bf16.msra.mxu0 %v4538_v7 }
  0xed   : > { %4126 = vmatprep.subr.bf16.mxu0 %v5058_v2 }
  0xf0   : > { %4127 = vmatpush3.bf16.msra.mxu0 %v4539_v8 }
  0xf1   : > { %4128 = vmatprep.subr.bf16.mxu0 %v5058_v2 }
  0xf4   : > { %4129 = vmatpush3.bf16.msra.mxu0 %v4540_v9 }
  0xf5   : > { %4130 = vmatprep.subr.bf16.mxu0 %v5058_v2 }
  0xf8   : > { %4131 = vmatpush3.bf16.msra.mxu0 %v4541_v10 }
  0xf9   : > { %4132 = vmatprep.subr.bf16.mxu0 %v5058_v2 }
  0xfc   : > { %4133 = vmatpush3.bf16.msra.mxu0 %v4542_v11 }
 0x15b   : > { %v932_v12 = vpop.permute.xlu0 %931 }
 0x15c   : > { %v939_v16 = vmul.f32 %v932_v12, %v925_v13 }
 0x15f   : > { %v937_v15 = vpop.permute.xlu0 %936 }
 0x160   : > { %v940_v17 = vmul.f32 %v937_v15, %v926_v14 }
 0x162   : > { %v941_v18 = vpack.c.bf16 %v940_v17, %v939_v16 }
 0x164   : > { %4135 = vmatmul.mubr.bf16.vlgmr.msra.gmra.mxu0 %v941_v18 }
 0x224   : > { %v1047_v20 = vpop.f32.mrf.mxu0 }
 0x225   : > { %v1048_v21 = vadd.f32 %v3867_v19, %v1047_v20 }
 0x226   : > { %v4136_v23 = vpop.f32.mrf.mxu0 }
 0x227   : > { %v1054_v24 = vmax.f32 %v1048_v21, 0.0 }
 0x228   : > { %v1050_v25 = vpop.f32.mrf.mxu0 }
 0x229   : > { %v1058_v26 = vadd.f32 %v1056_v22, %v1054_v24  ;;  %v1051_v27 = vadd.f32 %v3867_v19, %v1050_v25 }
 0x22a   : > { %v4137_v29 = vpop.f32.mrf.mxu0 }
 0x22b   : > { %1060 = vst [vmem:[#allocation2] sm:$0xff] %v1058_v26  ;;  %v1055_v30 = vmax.f32 %v1051_v27, 0.0 }
 0x22d   : > { %v1059_v31 = vadd.f32 %v1057_v28, %v1055_v30 }
 0x22f   : > { %1061 = vst [vmem:[#allocation2 + $0x8] sm:$0xff] %v1059_v31 }
 0x230 PF: > { %v4543_v32 = vld [vmem:[%s5412_s18 + $0xac] ss:$12 sps:$4 sm:$0xff]   ;;  %v4545_v33 = vld [vmem:[%s5412_s18 + $0xa8] ss:$12 sps:$4 sm:$0xff]   ;;  %v5060_v34 = vmov 0   ;;  %v5061_v53 = vmov 0.0  }
 0x231   : > { %1257 = vmatprep.mubr.bf16.mxu0 %v5060_v34  ;;  %1225 = vmatprep.subr.bf16.mxu0 %v4543_v32  ;;  %v4546_v35 = vld [vmem:[%s5412_s18 + $0x94] ss:$12 sps:$4 sm:$0xff]   ;;  %v4548_v36 = vld [vmem:[%s5412_s18 + $0x90] ss:$12 sps:$4 sm:$0xff]   ;;  %v4551_v38 = vld [vmem:[%s5412_s18 + $0x78] ss:$12 sps:$4 sm:$0xff]  }
 0x232   : > { %1226 = vmatpush1.bf16.msra.mxu0 %v4545_v33  ;;  %v4549_v37 = vld [vmem:[%s5412_s18 + $0x7c] ss:$12 sps:$4 sm:$0xff]   ;;  %v4552_v39 = vld [vmem:[%s5412_s18 + $0x64] ss:$12 sps:$4 sm:$0xff]   ;;  %v4554_v40 = vld [vmem:[%s5412_s18 + $0x60] ss:$12 sps:$4 sm:$0xff]   ;;  %4138 = vmatprep.subr.bf16.mxu1 %v5061_v53 }
 0x233   : > { %1227 = vmatprep.subr.bf16.mxu0 %v4546_v35  ;;  %v4555_v41 = vld [vmem:[%s5412_s18 + $0x4c] ss:$12 sps:$4 sm:$0xff]   ;;  %v4557_v42 = vld [vmem:[%s5412_s18 + $0x48] ss:$12 sps:$4 sm:$0xff]   ;;  %v4560_v44 = vld [vmem:[%s5412_s18 + $0x30] ss:$12 sps:$4 sm:$0xff]  }
 0x234   : > { %v4558_v43 = vld [vmem:[%s5412_s18 + $0x34] ss:$12 sps:$4 sm:$0xff]   ;;  %v4561_v45 = vld [vmem:[%s5412_s18 + $0x1c] ss:$12 sps:$4 sm:$0xff]   ;;  %v4563_v46 = vld [vmem:[%s5412_s18 + $0x18] ss:$12 sps:$4 sm:$0xff]  }
 0x235   : > { %v4564_v47 = vld [vmem:[%s5412_s18 + $0x4] ss:$12 sps:$4 sm:$0xff]   ;;  %v4566_v48 = vld [vmem:[%s5412_s18] ss:$12 sps:$4 sm:$0xff]   ;;  %vm5062_vm1 = vmmov 0   ;;  %vm1309_vm2 = vcmask 130048  }
 0x236   : > { %1228 = vmatpush1.bf16.msra.mxu0 %v4548_v36  ;;  %v1062_v49 = vld [vmem:[#allocation2] sm:$0xff]  ;;  %v1063_v50 = vld [vmem:[#allocation2 + $0x8] sm:$0xff]  ;;  %4154 = vmatprep.mubr.msk.bf16.mxu1 %vm5062_vm1, %v5061_v53  ;;  %s5063_s12 = smov 112   ;;  %s5064_s16 = smov 96   ;;  %vm1712_vm3 = vcmask 261248   ;;  %vm1923_vm4 = vcmask 392448  }
 0x237   : > { %1229 = vmatprep.subr.bf16.mxu0 %v4549_v37  ;;  %v1064_v51 = vpack.c.bf16 %v1063_v50, %v1062_v49  ;;  %v4567_v52 = vld [vmem:[%s5412_s18 + $0xb0] ss:$12 sps:$4 sm:$0xff]   ;;  %v4568_v54 = vld [vmem:[%s5412_s18 + $0x98] ss:$12 sps:$4 sm:$0xff]   ;;  %v4569_v55 = vld [vmem:[%s5412_s18 + $0x80] ss:$12 sps:$4 sm:$0xff]  }
 0x238   : > { %4139 = vmatpush3.bf16.msra.mxu1 %v4567_v52  ;;  %v4570_v59 = vld [vmem:[%s5412_s18 + $0x68] ss:$12 sps:$4 sm:$0xff]   ;;  %v4571_v61 = vld [vmem:[%s5412_s18 + $0x50] ss:$12 sps:$4 sm:$0xff]   ;;  %v4572_v62 = vld [vmem:[%s5412_s18 + $0x38] ss:$12 sps:$4 sm:$0xff]  }
 0x239   : > { %4140 = vmatprep.subr.bf16.mxu1 %v5061_v53  ;;  %v4573_v63 = vld [vmem:[%s5412_s18 + $0x20] ss:$12 sps:$4 sm:$0xff]   ;;  %v4574_v0 = vld [vmem:[%s5412_s18 + $0x8] ss:$12 sps:$4 sm:$0xff]   ;;  %s5065_s28 = smov 80   ;;  %s5066_s29 = smov 64  }
 0x23a   : > { %1230 = vmatpush1.bf16.msra.mxu0 %v4551_v38  ;;  %s5067_s2 = smov 48   ;;  %s5068_s18 = smov 32   ;;  %vm2134_vm5 = vcmask 523648   ;;  %vm2345_vm6 = vcmask 654848   ;;  %vm2556_vm7 = vcmask 786048   ;;  %vm2767_vm8 = vcmask 917248  }
 0x23b   : > { %1231 = vmatprep.subr.bf16.mxu0 %v4552_v39  ;;  %s5069_s19 = smov 16   ;;  %vm2978_vm9 = vcmask 1048448   ;;  %s6069_s22 = sld [smem:[#allocation48_spill]] }
 0x23c   : > { %4141 = vmatpush3.bf16.msra.mxu1 %v4568_v54 }
 0x23d   : > { %4142 = vmatprep.subr.bf16.mxu1 %v5061_v53 }
 0x23e   : > { %1232 = vmatpush1.bf16.msra.mxu0 %v4554_v40 }
 0x23f   : > { %1233 = vmatprep.subr.bf16.mxu0 %v4555_v41 }
 0x240   : > { %4143 = vmatpush3.bf16.msra.mxu1 %v4569_v55 }
 0x241   : > { %4144 = vmatprep.subr.bf16.mxu1 %v5061_v53  ;;  %s6070_s5 = scalar_lea.vmem %s6069_s22, %s5438_s26 }
 0x242   : > { %1234 = vmatpush1.bf16.msra.mxu0 %v4557_v42 }
 0x243   : > { %1235 = vmatprep.subr.bf16.mxu0 %v4558_v43 }
 0x244   : > { %4145 = vmatpush3.bf16.msra.mxu1 %v4570_v59 }
 0x245   : > { %4146 = vmatprep.subr.bf16.mxu1 %v5061_v53 }
 0x246   : > { %1236 = vmatpush1.bf16.msra.mxu0 %v4560_v44 }
 0x247   : > { %1237 = vmatprep.subr.bf16.mxu0 %v4561_v45 }
 0x248   : > { %4147 = vmatpush3.bf16.msra.mxu1 %v4571_v61 }
 0x249   : > { %4148 = vmatprep.subr.bf16.mxu1 %v5061_v53 }
 0x24a   : > { %1238 = vmatpush1.bf16.msra.mxu0 %v4563_v46 }
 0x24b   : > { %1239 = vmatprep.subr.bf16.mxu0 %v4564_v47 }
 0x24c   : > { %4149 = vmatpush3.bf16.msra.mxu1 %v4572_v62 }
 0x24d   : > { %4150 = vmatprep.subr.bf16.mxu1 %v5061_v53 }
 0x24e   : > { %1240 = vmatpush1.bf16.msra.mxu0 %v4566_v48 }
 0x250   : > { %4151 = vmatpush3.bf16.msra.mxu1 %v4573_v63 }
 0x251   : > { %1258 = vmatmul.mubr.bf16.vlgmr.msra.gmra.mxu0 %v1064_v51  ;;  %4152 = vmatprep.subr.bf16.mxu1 %v5061_v53 }
 0x254   : > { %4153 = vmatpush3.bf16.msra.mxu1 %v4574_v0 }
 0x257   : > { %4155 = vmatmul.mubr.bf16.vlgmr.msra.gmra.mxu1 %v1064_v51 }
 0x311   : > { %v5504_v56 = vpop.f32.mrf.mxu0 }
 0x312   : > { %4162 = vmatprep.mubr.msk.f32.mxu0 %vm1309_vm2, %v5504_v56 }
 0x313   : > { %v5509_v57 = vpop.f32.mrf.mxu0 }
 0x314   : > { %1506 = vrot.lane.b32.xlu1 %v5509_v57, %s5063_s12 }
 0x315   : > { %v5513_v58 = vpop.f32.mrf.mxu0 }
 0x317   : > { %v5517_v60 = vpop.f32.mrf.mxu0  ;;  %v5541_v5 = vpop.f32.mrf.mxu1 }
 0x318   : > { %1502 = vrot.lane.b32.xlu1 %v5504_v56, %s5063_s12  ;;  %4158 = vmatprep.subr.msk.mxu0 %vm1309_vm2, %v5517_v60 }
 0x319   : > { %4159 = vmatpush3.xpose.msk.msra.mxu0 %vm1309_vm2, %v5517_v60  ;;  %v4156_v6 = vpop.f32.mrf.mxu1 }
 0x31a   : > { %4160 = vmatprep.subr.msk.mxu0 %vm1309_vm2, %v5509_v57 }
 0x31b   : > { %v5543_v7 = vpop.f32.mrf.mxu1 }
 0x31d   : > { %4161 = vmatpush3.xpose.msk.msra.mxu0 %vm1309_vm2, %v5509_v57  ;;  %v4157_v8 = vpop.f32.mrf.mxu1 }
 0x31e   : > { %4165 = vmatprep.subr.mxu0 %v5543_v7 }
 0x320   : > { %4163 = vmatmul.mubr.msk.f32.vlgmr.msra.gmra.mxu0 %vm1309_vm2, %v5513_v58 }
 0x321   : > { %4166 = vmatpush3.msra.mxu0 %v5543_v7 }
 0x322   : > { %4167 = vmatprep.subr.mxu0 %v5541_v5 }
 0x323   : > { %4168 = vmatpush3.msra.mxu0 %v5541_v5 }
 0x386   : > { %v1507_v20 = vpop.permute.xlu1 %1506 }
 0x38a   : > { %v1503_v21 = vpop.permute.xlu1 %1502 }
 0x3e0   : > { %v4164_v1 = vpop.f32.mrf.mxu0 }
 0x3e1   : > { %v1400_v4 = vsel %vm1309_vm2, %v4164_v1, -inf }
 0x3e2   : > { %v1388_v2 = vpop.f32.mrf.mxu0 }
 0x3e3   : > { %v1397_v3 = vsel %vm1309_vm2, %v1388_v2, -inf }
 0x3e4   : > { %1398 = vmax.xlane.f32.xlu0 %v1397_v3 }
 0x3e8   : > { %1401 = vmax.xlane.f32.xlu0 %v1400_v4 }
 0x3fe   : > { %1508 = vrot.lane.b32.xlu0 %v5517_v60, %s5063_s12 }
 0x402   : > { %1504 = vrot.lane.b32.xlu0 %v5513_v58, %s5063_s12 }
 0x406   : > { %1715 = vrot.lane.b32.xlu0 %v5504_v56, %s5064_s16 }
 0x46d   : > { %v1399_v9 = vpop.xlane.xlu0 %1398 }
 0x46e   : > { %v1403_v10 = vsub.f32 %v1388_v2, %v1399_v9 }
 0x470   : > { %v1405_v13 = vmul.f32 1.442695, %v1403_v10 }
 0x471   : > { %v1402_v11 = vpop.xlane.xlu0 %1401 }
 0x472   : > { %v1404_v12 = vsub.f32 %v4164_v1, %v1402_v11 }
 0x474   : > { %v1407_v14 = vmul.f32 1.442695, %v1404_v12 }
 0x475   : > { %v1509_v15 = vpop.permute.xlu0 %1508 }
 0x476   : > { %4599 = vpow2.f32 %v1407_v14  ;;  %4172 = vmatprep.subr.msk.mxu0 %vm1309_vm2, %v1509_v15 }
 0x477   : > { %4601 = vpow2.f32 %v1405_v13 }
 0x479   : > { %v1505_v28 = vpop.permute.xlu0 %1504 }
 0x47d   : > { %v1716_v30 = vpop.permute.xlu0 %1715 }
 0x483   : > { %v4600_v16 = vpop.eup %4599 }
 0x484   : > { %v1412_v17 = vsel %vm1309_vm2, %v4600_v16, 0.0  ;;  %v4602_v18 = vpop.eup %4601 }
 0x485   : > { %1413 = vadd.xlane.f32.xlu1 %v1412_v17  ;;  %v1409_v19 = vsel %vm1309_vm2, %v4602_v18, 0.0 }
 0x489   : > { %1410 = vadd.xlane.f32.xlu1 %v1409_v19 }
 0x49a   : > { %1721 = vrot.lane.b32.xlu1 %v5517_v60, %s5064_s16 }
 0x49e   : > { %1719 = vrot.lane.b32.xlu1 %v5509_v57, %s5064_s16 }
 0x4a2   : > { %1717 = vrot.lane.b32.xlu1 %v5513_v58, %s5064_s16 }
 0x50e   : > { %v1414_v22 = vpop.xlane.xlu1 %1413 }
 0x50f   : > { %4603 = vrcp.f32 %v1414_v22 }
 0x512   : > { %v1411_v23 = vpop.xlane.xlu1 %1410 }
 0x513   : > { %4605 = vrcp.f32 %v1411_v23 }
 0x516   : > { %v1722_v29 = vpop.permute.xlu1 %1721 }
 0x51a   : > { %v1720_v31 = vpop.permute.xlu1 %1719 }
 0x51c   : > { %v4604_v24 = vpop.eup %4603 }
 0x51d   : > { %v1418_v27 = vmul.f32 %v4604_v24, %v4600_v16 }
 0x51e   : > { %v1718_v32 = vpop.permute.xlu1 %1717 }
 0x520   : > { %v4606_v25 = vpop.eup %4605 }
 0x521   : > { %v1417_v26 = vmul.f32 %v4606_v25, %v4602_v18 }
 0x523   : > { %4169 = vmatprep.mubr.msk.f32.mxu0 %vm1309_vm2, %v1417_v26 }
 0x524   : > { %4170 = vmatmul.mubr.msk.f32.vlgmr.msra.gmra.mxu0 %vm1309_vm2, %v1418_v27 }
 0x525   : > { %4173 = vmatpush3.xpose.msk.msra.mxu0 %vm1309_vm2, %v1509_v15  ;;  %4176 = vmatprep.mubr.msk.f32.mxu0 %vm1309_vm2, %v1503_v21 }
 0x526   : > { %4174 = vmatprep.subr.msk.mxu0 %vm1309_vm2, %v1507_v20 }
 0x529   : > { %4175 = vmatpush3.xpose.msk.msra.mxu0 %vm1309_vm2, %v1507_v20 }
 0x52a   : > { %4186 = vmatprep.subr.msk.mxu0 %vm1309_vm2, %v1722_v29 }
 0x52c   : > { %4177 = vmatmul.mubr.msk.f32.vlgmr.msra.gmra.mxu0 %vm1309_vm2, %v1505_v28 }
 0x52d   : > { %4187 = vmatpush3.xpose.msk.msra.mxu0 %vm1309_vm2, %v1722_v29  ;;  %4190 = vmatprep.mubr.msk.f32.mxu0 %vm1309_vm2, %v1716_v30 }
 0x52e   : > { %4188 = vmatprep.subr.msk.mxu0 %vm1309_vm2, %v1720_v31 }
 0x531   : > { %4189 = vmatpush3.xpose.msk.msra.mxu0 %vm1309_vm2, %v1720_v31 }
 0x534   : > { %4191 = vmatmul.mubr.msk.f32.vlgmr.msra.gmra.mxu0 %vm1309_vm2, %v1718_v32 }
 0x5e4   : > { %v4171_v33 = vpop.f32.mrf.mxu0 }
 0x5e5   : > { %1501 = vst.msk [vmem:[#allocation3 + $0x8] sm:$0xff] %vm1309_vm2, %v4171_v33 }
 0x5e6   : > { %v1491_v34 = vpop.f32.mrf.mxu0 }
 0x5e7   : > { %1500 = vst.msk [vmem:[#allocation3] sm:$0xff] %vm1309_vm2, %v1491_v34 }
 0x5ec   : > { %v4178_v35 = vpop.f32.mrf.mxu0 }
 0x5ed   : > { %v1596_v41 = vsel %vm1309_vm2, %v4178_v35, -inf }
 0x5ee   : > { %v5579_v36 = vpop.f32.mrf.mxu0 }
 0x5ef   : > { %v1593_v0 = vsel %vm1309_vm2, %v5579_v36, -inf }
 0x5f4   : > { %v4192_v37 = vpop.f32.mrf.mxu0 }
 0x5f5   : > { %v1809_v38 = vsel %vm1309_vm2, %v4192_v37, -inf }
 0x5f6   : > { %1810 = vmax.xlane.f32.xlu1 %v1809_v38  ;;  %v1797_v39 = vpop.f32.mrf.mxu0 }
 0x5f7   : > { %v1806_v40 = vsel %vm1309_vm2, %v1797_v39, -inf }
 0x5f8   : > { %1807 = vmax.xlane.f32.xlu0 %v1806_v40 }
 0x607   : > { %1828 = vrot.lane.b32.xlu1 %v5541_v5, %s5064_s16 }
 0x60b   : > { %1932 = vrot.lane.b32.xlu1 %v5517_v60, %s5065_s28 }
 0x60f   : > { %1930 = vrot.lane.b32.xlu1 %v5509_v57, %s5065_s28 }
 0x613   : > { %1928 = vrot.lane.b32.xlu1 %v5513_v58, %s5065_s28 }
 0x637   : > { %1597 = vmax.xlane.f32.xlu1 %v1596_v41 }
 0x67f   : > { %v1811_v42 = vpop.xlane.xlu1 %1810 }
 0x680   : > { %v1813_v43 = vsub.f32 %v4192_v37, %v1811_v42 }
 0x681   : > { %v1808_v44 = vpop.xlane.xlu0 %1807 }
 0x682   : > { %v1816_v45 = vmul.f32 1.442695, %v1813_v43  ;;  %v1812_v46 = vsub.f32 %v1797_v39, %v1808_v44 }
 0x683   : > { %v1829_v52 = vpop.permute.xlu1 %1828 }
 0x684   : > { %4607 = vpow2.f32 %v1816_v45  ;;  %v1814_v47 = vmul.f32 1.442695, %v1812_v46 }
 0x686   : > { %4609 = vpow2.f32 %v1814_v47 }
 0x687   : > { %v1933_v54 = vpop.permute.xlu1 %1932 }
 0x68b   : > { %v1931_v55 = vpop.permute.xlu1 %1930 }
 0x68f   : > { %v1929_v59 = vpop.permute.xlu1 %1928 }
 0x691   : > { %v4608_v48 = vpop.eup %4607 }
 0x692   : > { %v1821_v49 = vsel %vm1309_vm2, %v4608_v48, 0.0 }
 0x693   : > { %v4610_v50 = vpop.eup %4609  ;;  %1822 = vadd.xlane.f32.xlu0 %v1821_v49 }
 0x694   : > { %v1818_v51 = vsel %vm1309_vm2, %v4610_v50, 0.0 }
 0x697   : > { %1819 = vadd.xlane.f32.xlu0 %v1818_v51 }
 0x6ad   : > { %1830 = vrot.lane.b32.xlu0 %v5543_v7, %s5064_s16 }
 0x6b1   : > { %1926 = vrot.lane.b32.xlu0 %v5504_v56, %s5065_s28 }
 0x6c0   : > { %v1598_v61 = vpop.xlane.xlu1 %1597 }
 0x6c1   : > { %v1600_v62 = vsub.f32 %v4178_v35, %v1598_v61 }
 0x6c3   : > { %v1603_v63 = vmul.f32 1.442695, %v1600_v62 }
 0x6c5   : > { %4611 = vpow2.f32 %v1603_v63 }
 0x6d0   : > { %1594 = vmax.xlane.f32.xlu0 %v1593_v0 }
 0x6d2   : > { %v5600_v1 = vpop.eup %4611 }
 0x6d3   : > { %v1608_v2 = vsel %vm1309_vm2, %v5600_v1, 0.0 }
 0x6d4   : > { %1609 = vadd.xlane.f32.xlu1 %v1608_v2 }
 0x6e5   : > { %1617 = vrot.lane.b32.xlu1 %v5541_v5, %s5063_s12 }
 0x6e9   : > { %2041 = vrot.lane.b32.xlu1 %v5543_v7, %s5065_s28 }
 0x6ed   : > { %2039 = vrot.lane.b32.xlu1 %v5541_v5, %s5065_s28 }
 0x71c   : > { %v1823_v3 = vpop.xlane.xlu0 %1822 }
 0x71d   : > { %4613 = vrcp.f32 %v1823_v3 }
 0x720   : > { %v1820_v4 = vpop.xlane.xlu0 %1819 }
 0x721   : > { %4615 = vrcp.f32 %v1820_v4 }
 0x724   : > { %v1831_v6 = vpop.permute.xlu0 %1830 }
 0x725   : > { %4193 = vmatprep.subr.mxu0 %v1831_v6 }
 0x726   : > { %4194 = vmatpush3.msra.mxu0 %v1831_v6 }
 0x727   : > { %4195 = vmatprep.subr.mxu0 %v1829_v52 }
 0x728   : > { %4196 = vmatpush3.msra.mxu0 %v1829_v52  ;;  %v1927_v12 = vpop.permute.xlu0 %1926 }
 0x729   : > { %4200 = vmatprep.subr.msk.mxu0 %vm1309_vm2, %v1933_v54 }
 0x72a   : > { %v4614_v8 = vpop.eup %4613 }
 0x72b   : > { %v1827_v11 = vmul.f32 %v4614_v8, %v4608_v48 }
 0x72e   : > { %v4616_v9 = vpop.eup %4615 }
 0x72f   : > { %v1826_v10 = vmul.f32 %v4616_v9, %v4610_v50 }
 0x731   : > { %4197 = vmatprep.mubr.msk.f32.mxu0 %vm1309_vm2, %v1826_v10 }
 0x732   : > { %4198 = vmatmul.mubr.msk.f32.vlgmr.msra.gmra.mxu0 %vm1309_vm2, %v1827_v11 }
 0x733   : > { %4201 = vmatpush3.xpose.msk.msra.mxu0 %vm1309_vm2, %v1933_v54  ;;  %4204 = vmatprep.mubr.msk.f32.mxu0 %vm1309_vm2, %v1927_v12 }
 0x734   : > { %4202 = vmatprep.subr.msk.mxu0 %vm1309_vm2, %v1931_v55 }
 0x737   : > { %4203 = vmatpush3.xpose.msk.msra.mxu0 %vm1309_vm2, %v1931_v55 }
 0x73a   : > { %4205 = vmatmul.mubr.msk.f32.vlgmr.msra.gmra.mxu0 %vm1309_vm2, %v1929_v59 }
 0x759   : > { %v1595_v13 = vpop.xlane.xlu0 %1594 }
 0x75a   : > { %v1599_v14 = vsub.f32 %v5579_v36, %v1595_v13 }
 0x75c   : > { %v1601_v15 = vmul.f32 1.442695, %v1599_v14 }
 0x75d   : > { %v1610_v27 = vpop.xlane.xlu1 %1609 }
 0x75e   : > { %4617 = vpow2.f32 %v1601_v15 }
 0x761   : > { %v1618_v32 = vpop.permute.xlu1 %1617 }
 0x765   : > { %v2042_v34 = vpop.permute.xlu1 %2041 }
 0x769   : > { %v2040_v43 = vpop.permute.xlu1 %2039 }
 0x76b   : > { %v4618_v22 = vpop.eup %4617 }
 0x76c   : > { %v1605_v23 = vsel %vm1309_vm2, %v4618_v22, 0.0 }
 0x7f2   : > { %v5619_v16 = vpop.f32.mrf.mxu0 }
 0x7f4   : > { %v5621_v17 = vpop.f32.mrf.mxu0 }
 0x7fa   : > { %v4206_v18 = vpop.f32.mrf.mxu0 }
 0x7fb   : > { %v2020_v21 = vsel %vm1309_vm2, %v4206_v18, -inf }
 0x7fc   : > { %v2008_v19 = vpop.f32.mrf.mxu0 }
 0x7fd   : > { %v2017_v20 = vsel %vm1309_vm2, %v2008_v19, -inf }
 0x7fe   : > { %2018 = vmax.xlane.f32.xlu0 %v2017_v20 }
 0x802   : > { %2021 = vmax.xlane.f32.xlu0 %v2020_v21 }
 0x806   : > { %1606 = vadd.xlane.f32.xlu0 %v1605_v23 }
 0x81c   : > { %1619 = vrot.lane.b32.xlu0 %v5543_v7, %s5063_s12 }
 0x887   : > { %v2019_v24 = vpop.xlane.xlu0 %2018 }
 0x888   : > { %v2023_v25 = vsub.f32 %v2008_v19, %v2019_v24 }
 0x88a   : > { %v2025_v26 = vmul.f32 1.442695, %v2023_v25 }
 0x88b   : > { %v2022_v28 = vpop.xlane.xlu0 %2021 }
 0x88c   : > { %4619 = vpow2.f32 %v2025_v26  ;;  %v2024_v29 = vsub.f32 %v4206_v18, %v2022_v28 }
 0x88d   : > { %4621 = vrcp.f32 %v1610_v27 }
 0x88e   : > { %v2027_v30 = vmul.f32 1.442695, %v2024_v29 }
 0x88f   : > { %v1607_v31 = vpop.xlane.xlu0 %1606 }
 0x890   : > { %4623 = vpow2.f32 %v2027_v30 }
 0x891   : > { %4625 = vrcp.f32 %v1607_v31 }
 0x893   : > { %v1620_v33 = vpop.permute.xlu0 %1619 }
 0x894   : > { %4179 = vmatprep.subr.mxu1 %v1620_v33 }
 0x895   : > { %4180 = vmatpush3.msra.mxu1 %v1620_v33 }
 0x896   : > { %4181 = vmatprep.subr.mxu1 %v1618_v32 }
 0x897   : > { %4182 = vmatpush3.msra.mxu1 %v1618_v32 }
 0x898   : > { %4207 = vmatprep.subr.mxu1 %v2042_v34 }
 0x899   : > { %v4620_v35 = vpop.eup %4619 }
 0x89a   : > { %v2029_v36 = vsel %vm1309_vm2, %v4620_v35, 0.0  ;;  %v4622_v37 = vpop.eup %4621 }
 0x89b   : > { %2030 = vadd.xlane.f32.xlu0 %v2029_v36  ;;  %v1614_v42 = vmul.f32 %v4622_v37, %v5600_v1 }
 0x89d   : > { %v4624_v38 = vpop.eup %4623 }
 0x89e   : > { %v4626_v39 = vpop.eup %4625  ;;  %v2032_v40 = vsel %vm1309_vm2, %v4624_v38, 0.0 }
 0x89f   : > { %2033 = vadd.xlane.f32.xlu1 %v2032_v40  ;;  %v1613_v41 = vmul.f32 %v4626_v39, %v4618_v22 }
 0x8a1   : > { %4183 = vmatprep.mubr.msk.f32.mxu1 %vm1309_vm2, %v1613_v41 }
 0x8a2   : > { %4184 = vmatmul.mubr.msk.f32.vlgmr.msra.gmra.mxu1 %vm1309_vm2, %v1614_v42 }
 0x8a3   : > { %4208 = vmatpush3.msra.mxu1 %v2042_v34 }
 0x8a4   : > { %4209 = vmatprep.subr.mxu1 %v2040_v43 }
 0x8a5   : > { %4210 = vmatpush3.msra.mxu1 %v2040_v43 }
 0x8b0   : > { %2141 = vrot.lane.b32.xlu1 %v5509_v57, %s5066_s29 }
 0x8b1   : > { %2143 = vrot.lane.b32.xlu0 %v5517_v60, %s5066_s29 }
 0x8b4   : > { %2139 = vrot.lane.b32.xlu1 %v5513_v58, %s5066_s29 }
 0x8b5   : > { %2137 = vrot.lane.b32.xlu0 %v5504_v56, %s5066_s29 }
 0x924   : > { %v2031_v44 = vpop.xlane.xlu0 %2030 }
 0x925   : > { %4627 = vrcp.f32 %v2031_v44 }
 0x928   : > { %v2034_v45 = vpop.xlane.xlu1 %2033  ;;  %v2144_v46 = vpop.permute.xlu0 %2143 }
 0x929   : > { %4629 = vrcp.f32 %v2034_v45  ;;  %4214 = vmatprep.subr.msk.mxu1 %vm1309_vm2, %v2144_v46 }
 0x92c   : > { %v2138_v51 = vpop.permute.xlu0 %2137  ;;  %v2142_v52 = vpop.permute.xlu1 %2141 }
 0x930   : > { %v2140_v54 = vpop.permute.xlu1 %2139 }
 0x932   : > { %v4628_v47 = vpop.eup %4627 }
 0x933   : > { %v2037_v48 = vmul.f32 %v4628_v47, %v4620_v35 }
 0x935   : > { %4211 = vmatprep.mubr.msk.f32.mxu1 %vm1309_vm2, %v2037_v48 }
 0x936   : > { %v4630_v49 = vpop.eup %4629 }
 0x937   : > { %v2038_v50 = vmul.f32 %v4630_v49, %v4624_v38 }
 0x939   : > { %4212 = vmatmul.mubr.msk.f32.vlgmr.msra.gmra.mxu1 %vm1309_vm2, %v2038_v50 }
 0x93a   : > { %4215 = vmatpush3.xpose.msk.msra.mxu1 %vm1309_vm2, %v2144_v46  ;;  %4218 = vmatprep.mubr.msk.f32.mxu1 %vm1309_vm2, %v2138_v51 }
 0x93b   : > { %4216 = vmatprep.subr.msk.mxu1 %vm1309_vm2, %v2142_v52 }
 0x93e   : > { %4217 = vmatpush3.xpose.msk.msra.mxu1 %vm1309_vm2, %v2142_v52 }
 0x941   : > { %4219 = vmatmul.mubr.msk.f32.vlgmr.msra.gmra.mxu1 %vm1309_vm2, %v2140_v54 }
 0x962   : > { %v5649_v55 = vpop.f32.mrf.mxu1 }
 0x964   : > { %v5651_v59 = vpop.f32.mrf.mxu1 }
 0x9f9   : > { %v5653_v61 = vpop.f32.mrf.mxu1 }
 0x9fb   : > { %v5655_v62 = vpop.f32.mrf.mxu1 }
 0xa01   : > { %v4220_v63 = vpop.f32.mrf.mxu1 }
 0xa02   : > { %v2231_v0 = vsel %vm1309_vm2, %v4220_v63, -inf }
 0xa03   : > { %2232 = vmax.xlane.f32.xlu1 %v2231_v0  ;;  %v2219_v1 = vpop.f32.mrf.mxu1 }
 0xa04   : > { %v2228_v2 = vsel %vm1309_vm2, %v2219_v1, -inf }
 0xa05   : > { %2229 = vmax.xlane.f32.xlu0 %v2228_v2 }
 0xa14   : > { %2250 = vrot.lane.b32.xlu1 %v5541_v5, %s5066_s29 }
 0xa18   : > { %2354 = vrot.lane.b32.xlu1 %v5517_v60, %s5067_s2 }
 0xa1c   : > { %2352 = vrot.lane.b32.xlu1 %v5509_v57, %s5067_s2 }
 0xa20   : > { %2350 = vrot.lane.b32.xlu1 %v5513_v58, %s5067_s2 }
 0xa8c   : > { %v2233_v3 = vpop.xlane.xlu1 %2232 }
 0xa8d   : > { %v2235_v4 = vsub.f32 %v4220_v63, %v2233_v3 }
 0xa8e   : > { %v2230_v6 = vpop.xlane.xlu0 %2229 }
 0xa8f   : > { %v2238_v8 = vmul.f32 1.442695, %v2235_v4  ;;  %v2234_v9 = vsub.f32 %v2219_v1, %v2230_v6 }
 0xa90   : > { %v2251_v19 = vpop.permute.xlu1 %2250 }
 0xa91   : > { %4631 = vpow2.f32 %v2238_v8  ;;  %v2236_v10 = vmul.f32 1.442695, %v2234_v9 }
 0xa93   : > { %4633 = vpow2.f32 %v2236_v10 }
 0xa94   : > { %v2355_v21 = vpop.permute.xlu1 %2354 }
 0xa98   : > { %v2353_v27 = vpop.permute.xlu1 %2352 }
 0xa9c   : > { %v2351_v28 = vpop.permute.xlu1 %2350 }
 0xa9e   : > { %v4632_v11 = vpop.eup %4631 }
 0xa9f   : > { %v2243_v12 = vsel %vm1309_vm2, %v4632_v11, 0.0 }
 0xaa0   : > { %v4634_v13 = vpop.eup %4633  ;;  %2244 = vadd.xlane.f32.xlu0 %v2243_v12 }
 0xaa1   : > { %v2240_v14 = vsel %vm1309_vm2, %v4634_v13, 0.0 }
 0xaa4   : > { %2241 = vadd.xlane.f32.xlu0 %v2240_v14 }
 0xaba   : > { %2252 = vrot.lane.b32.xlu0 %v5543_v7, %s5066_s29 }
 0xabe   : > { %2348 = vrot.lane.b32.xlu0 %v5504_v56, %s5067_s2 }
 0xb29   : > { %v2245_v15 = vpop.xlane.xlu0 %2244 }
 0xb2a   : > { %4635 = vrcp.f32 %v2245_v15 }
 0xb2d   : > { %v2242_v18 = vpop.xlane.xlu0 %2241 }
 0xb2e   : > { %4637 = vrcp.f32 %v2242_v18 }
 0xb31   : > { %v2253_v20 = vpop.permute.xlu0 %2252 }
 0xb32   : > { %4221 = vmatprep.subr.mxu0 %v2253_v20 }
 0xb33   : > { %4222 = vmatpush3.msra.mxu0 %v2253_v20 }
 0xb34   : > { %4223 = vmatprep.subr.mxu0 %v2251_v19 }
 0xb35   : > { %4224 = vmatpush3.msra.mxu0 %v2251_v19  ;;  %v2349_v26 = vpop.permute.xlu0 %2348 }
 0xb36   : > { %4228 = vmatprep.subr.msk.mxu0 %vm1309_vm2, %v2355_v21 }
 0xb37   : > { %v4636_v22 = vpop.eup %4635 }
 0xb38   : > { %v2249_v25 = vmul.f32 %v4636_v22, %v4632_v11 }
 0xb3b   : > { %v4638_v23 = vpop.eup %4637 }
 0xb3c   : > { %v2248_v24 = vmul.f32 %v4638_v23, %v4634_v13 }
 0xb3e   : > { %4225 = vmatprep.mubr.msk.f32.mxu0 %vm1309_vm2, %v2248_v24 }
 0xb3f   : > { %4226 = vmatmul.mubr.msk.f32.vlgmr.msra.gmra.mxu0 %vm1309_vm2, %v2249_v25 }
 0xb40   : > { %4229 = vmatpush3.xpose.msk.msra.mxu0 %vm1309_vm2, %v2355_v21  ;;  %4232 = vmatprep.mubr.msk.f32.mxu0 %vm1309_vm2, %v2349_v26 }
 0xb41   : > { %4230 = vmatprep.subr.msk.mxu0 %vm1309_vm2, %v2353_v27 }
 0xb44   : > { %4231 = vmatpush3.xpose.msk.msra.mxu0 %vm1309_vm2, %v2353_v27 }
 0xb47   : > { %4233 = vmatmul.mubr.msk.f32.vlgmr.msra.gmra.mxu0 %vm1309_vm2, %v2351_v28 }
 0xbff   : > { %v5681_v29 = vpop.f32.mrf.mxu0 }
 0xc01   : > { %v5683_v30 = vpop.f32.mrf.mxu0 }
 0xc07   : > { %v4234_v31 = vpop.f32.mrf.mxu0 }
 0xc08   : > { %v2442_v32 = vsel %vm1309_vm2, %v4234_v31, -inf }
 0xc09   : > { %2443 = vmax.xlane.f32.xlu1 %v2442_v32  ;;  %v2430_v33 = vpop.f32.mrf.mxu0 }
 0xc0a   : > { %v2439_v34 = vsel %vm1309_vm2, %v2430_v33, -inf }
 0xc0b   : > { %2440 = vmax.xlane.f32.xlu0 %v2439_v34 }
 0xc1a   : > { %2461 = vrot.lane.b32.xlu1 %v5541_v5, %s5067_s2 }
 0xc1e   : > { %2565 = vrot.lane.b32.xlu1 %v5517_v60, %s5068_s18 }
 0xc22   : > { %2563 = vrot.lane.b32.xlu1 %v5509_v57, %s5068_s18 }
 0xc26   : > { %2561 = vrot.lane.b32.xlu1 %v5513_v58, %s5068_s18 }
 0xc92   : > { %v2444_v35 = vpop.xlane.xlu1 %2443 }
 0xc93   : > { %v2446_v36 = vsub.f32 %v4234_v31, %v2444_v35 }
 0xc94   : > { %v2441_v37 = vpop.xlane.xlu0 %2440 }
 0xc95   : > { %v2449_v38 = vmul.f32 1.442695, %v2446_v36  ;;  %v2445_v39 = vsub.f32 %v2430_v33, %v2441_v37 }
 0xc96   : > { %v2462_v47 = vpop.permute.xlu1 %2461 }
 0xc97   : > { %4639 = vpow2.f32 %v2449_v38  ;;  %v2447_v40 = vmul.f32 1.442695, %v2445_v39 }
 0xc99   : > { %4641 = vpow2.f32 %v2447_v40 }
 0xc9a   : > { %v2566_v49 = vpop.permute.xlu1 %2565 }
 0xc9e   : > { %v2564_v0 = vpop.permute.xlu1 %2563 }
 0xca2   : > { %v2562_v1 = vpop.permute.xlu1 %2561 }
 0xca4   : > { %v4640_v41 = vpop.eup %4639 }
 0xca5   : > { %v2454_v42 = vsel %vm1309_vm2, %v4640_v41, 0.0 }
 0xca6   : > { %v4642_v43 = vpop.eup %4641  ;;  %2455 = vadd.xlane.f32.xlu0 %v2454_v42 }
 0xca7   : > { %v2451_v44 = vsel %vm1309_vm2, %v4642_v43, 0.0 }
 0xcaa   : > { %2452 = vadd.xlane.f32.xlu0 %v2451_v44 }
 0xcc0   : > { %2463 = vrot.lane.b32.xlu0 %v5543_v7, %s5067_s2 }
 0xcc4   : > { %2559 = vrot.lane.b32.xlu0 %v5504_v56, %s5068_s18 }
 0xd2f   : > { %v2456_v45 = vpop.xlane.xlu0 %2455 }
 0xd30   : > { %4643 = vrcp.f32 %v2456_v45 }
 0xd33   : > { %v2453_v46 = vpop.xlane.xlu0 %2452 }
 0xd34   : > { %4645 = vrcp.f32 %v2453_v46 }
 0xd37   : > { %v2464_v48 = vpop.permute.xlu0 %2463 }
 0xd38   : > { %4235 = vmatprep.subr.mxu1 %v2464_v48 }
 0xd39   : > { %4236 = vmatpush3.msra.mxu1 %v2464_v48 }
 0xd3a   : > { %4237 = vmatprep.subr.mxu1 %v2462_v47 }
 0xd3b   : > { %4238 = vmatpush3.msra.mxu1 %v2462_v47  ;;  %v2560_v63 = vpop.permute.xlu0 %2559 }
 0xd3c   : > { %4242 = vmatprep.subr.msk.mxu1 %vm1309_vm2, %v2566_v49 }
 0xd3d   : > { %v4644_v50 = vpop.eup %4643 }
 0xd3e   : > { %v2460_v54 = vmul.f32 %v4644_v50, %v4640_v41 }
 0xd41   : > { %v4646_v51 = vpop.eup %4645 }
 0xd42   : > { %v2459_v52 = vmul.f32 %v4646_v51, %v4642_v43 }
 0xd44   : > { %4239 = vmatprep.mubr.msk.f32.mxu1 %vm1309_vm2, %v2459_v52 }
 0xd45   : > { %4240 = vmatmul.mubr.msk.f32.vlgmr.msra.gmra.mxu1 %vm1309_vm2, %v2460_v54 }
 0xd46   : > { %4243 = vmatpush3.xpose.msk.msra.mxu1 %vm1309_vm2, %v2566_v49  ;;  %4246 = vmatprep.mubr.msk.f32.mxu1 %vm1309_vm2, %v2560_v63 }
 0xd47   : > { %4244 = vmatprep.subr.msk.mxu1 %vm1309_vm2, %v2564_v0 }
 0xd4a   : > { %4245 = vmatpush3.xpose.msk.msra.mxu1 %vm1309_vm2, %v2564_v0 }
 0xd4d   : > { %4247 = vmatmul.mubr.msk.f32.vlgmr.msra.gmra.mxu1 %vm1309_vm2, %v2562_v1 }
 0xe05   : > { %v5709_v2 = vpop.f32.mrf.mxu1 }
 0xe07   : > { %v5711_v3 = vpop.f32.mrf.mxu1 }
 0xe0d   : > { %v4248_v4 = vpop.f32.mrf.mxu1 }
 0xe0e   : > { %v2653_v6 = vsel %vm1309_vm2, %v4248_v4, -inf }
 0xe0f   : > { %2654 = vmax.xlane.f32.xlu1 %v2653_v6  ;;  %v2641_v8 = vpop.f32.mrf.mxu1  ;;  %v4577_v6 = vld [vmem:[%s5418_s17 + $0x28] sm:$0xff]  }
 0xe10   : > { %v2650_v9 = vsel %vm1309_vm2, %v2641_v8, -inf }
 0xe11   : > { %2651 = vmax.xlane.f32.xlu0 %v2650_v9  ;;  %v4579_v9 = vld [vmem:[%s5418_s17 + $0x18] sm:$0xff]  }
 0xe20   : > { %2672 = vrot.lane.b32.xlu1 %v5541_v5, %s5068_s18 }
 0xe24   : > { %2776 = vrot.lane.b32.xlu1 %v5517_v60, %s5069_s19 }
 0xe28   : > { %2774 = vrot.lane.b32.xlu1 %v5509_v57, %s5069_s19 }
 0xe2c   : > { %2772 = vrot.lane.b32.xlu1 %v5513_v58, %s5069_s19 }
 0xe98   : > { %v2655_v10 = vpop.xlane.xlu1 %2654 }
 0xe99   : > { %v2657_v11 = vsub.f32 %v4248_v4, %v2655_v10  ;;  %v4576_v4 = vld [vmem:[%s5418_s17 + $0x30] sm:$0xff]  }
 0xe9a   : > { %v2652_v12 = vpop.xlane.xlu0 %2651  ;;  %v4580_v10 = vld [vmem:[%s5418_s17 + $0x10] sm:$0xff]  }
 0xe9b   : > { %v2660_v13 = vmul.f32 1.442695, %v2657_v11  ;;  %v2656_v14 = vsub.f32 %v2641_v8, %v2652_v12  ;;  %v4578_v8 = vld [vmem:[%s5418_s17 + $0x20] sm:$0xff]   ;;  %v4581_v11 = vld [vmem:[%s5418_s17 + $0x8] sm:$0xff]  }
 0xe9c   : > { %v2673_v21 = vpop.permute.xlu1 %2672  ;;  %v4582_v12 = vld [vmem:[%s5418_s17] sm:$0xff]  }
 0xe9d   : > { %4647 = vpow2.f32 %v2660_v13  ;;  %v2658_v15 = vmul.f32 1.442695, %v2656_v14 }
 0xe9f   : > { %4649 = vpow2.f32 %v2658_v15 }
 0xea0   : > { %v2777_v23 = vpop.permute.xlu1 %2776 }
 0xea4   : > { %v2775_v28 = vpop.permute.xlu1 %2774 }
 0xea8   : > { %v2773_v31 = vpop.permute.xlu1 %2772 }
 0xeaa   : > { %v4648_v18 = vpop.eup %4647 }
 0xeab   : > { %v2665_v19 = vsel %vm1309_vm2, %v4648_v18, 0.0 }
 0xeac   : > { %v4650_v20 = vpop.eup %4649  ;;  %2666 = vadd.xlane.f32.xlu0 %v2665_v19 }
 0xead   : > { %v2662_v60 = vsel %vm1309_vm2, %v4650_v20, 0.0 }
 0xeb0   : > { %2663 = vadd.xlane.f32.xlu0 %v2662_v60 }
 0xec6   : > { %2674 = vrot.lane.b32.xlu0 %v5543_v7, %s5068_s18 }
 0xeca   : > { %2770 = vrot.lane.b32.xlu0 %v5504_v56, %s5069_s19 }
 0xf35   : > { %v2667_v57 = vpop.xlane.xlu0 %2666 }
 0xf36   : > { %4651 = vrcp.f32 %v2667_v57  ;;  %v3948_v57 = vld [vmem:[%s6070_s5] ss:$0 sm:$0xff] }
 0xf39   : > { %v2664_v58 = vpop.xlane.xlu0 %2663 }
 0xf3a   : > { %4653 = vrcp.f32 %v2664_v58 }
 0xf3d   : > { %v2675_v22 = vpop.permute.xlu0 %2674 }
 0xf3e   : > { %4249 = vmatprep.subr.mxu0 %v2675_v22 }
 0xf3f   : > { %4250 = vmatpush3.msra.mxu0 %v2675_v22 }
 0xf40   : > { %4251 = vmatprep.subr.mxu0 %v2673_v21 }
 0xf41   : > { %4252 = vmatpush3.msra.mxu0 %v2673_v21  ;;  %v2771_v56 = vpop.permute.xlu0 %2770 }
 0xf42   : > { %4256 = vmatprep.subr.msk.mxu0 %vm1309_vm2, %v2777_v23 }
 0xf43   : > { %v4652_v24 = vpop.eup %4651 }
 0xf44   : > { %v2671_v27 = vmul.f32 %v4652_v24, %v4648_v18 }
 0xf47   : > { %v4654_v25 = vpop.eup %4653 }
 0xf48   : > { %v2670_v26 = vmul.f32 %v4654_v25, %v4650_v20 }
 0xf4a   : > { %4253 = vmatprep.mubr.msk.f32.mxu0 %vm1309_vm2, %v2670_v26 }
 0xf4b   : > { %4254 = vmatmul.mubr.msk.f32.vlgmr.msra.gmra.mxu0 %vm1309_vm2, %v2671_v27 }
 0xf4c   : > { %4257 = vmatpush3.xpose.msk.msra.mxu0 %vm1309_vm2, %v2777_v23  ;;  %4260 = vmatprep.mubr.msk.f32.mxu0 %vm1309_vm2, %v2771_v56  ;;  %v4679_v23 = vld [vmem:[#allocation2] sm:$0xff]  ;;  %v4680_v56 = vld [vmem:[#allocation2 + $0x8] sm:$0xff] }
 0xf4d   : > { %4258 = vmatprep.subr.msk.mxu0 %vm1309_vm2, %v2775_v28 }
 0xf50   : > { %4259 = vmatpush3.xpose.msk.msra.mxu0 %vm1309_vm2, %v2775_v28 }
 0xf51   : > { %4290 = vmatprep.subr.bf16.mxu0 %v5061_v53 }
 0xf53   : > { %4261 = vmatmul.mubr.msk.f32.vlgmr.msra.gmra.mxu0 %vm1309_vm2, %v2773_v31  ;;  %v4583_v31 = vld [vmem:[%s5420_s9 + $0x38] sm:$0xff]  }
 0xf54   : > { %4306 = vmatprep.mubr.msk.bf16.mxu0 %vm5062_vm1, %v5061_v53  ;;  %4291 = vmatpush3.bf16.msra.mxu0 %v4583_v31 }
 0xf55   : > { %4292 = vmatprep.subr.bf16.mxu0 %v5061_v53 }
0x100b   : > { %v4255_v32 = vpop.f32.mrf.mxu0 }
0x100d   : > { %v2750_v33 = vpop.f32.mrf.mxu0 }
0x1013   : > { %v4262_v34 = vpop.f32.mrf.mxu0 }
0x1014   : > { %v2864_v35 = vsel %vm1309_vm2, %v4262_v34, -inf }
0x1015   : > { %2865 = vmax.xlane.f32.xlu1 %v2864_v35  ;;  %v2852_v36 = vpop.f32.mrf.mxu0 }
0x1016   : > { %v2861_v37 = vsel %vm1309_vm2, %v2852_v36, -inf }
0x1017   : > { %2862 = vmax.xlane.f32.xlu0 %v2861_v37 }
0x1026   : > { %2883 = vrot.lane.b32.xlu1 %v5541_v5, %s5069_s19 }
0x102a   : > { %1706 = vrot.lane.b32.xlu1 %v5651_v59, %s5069_s19 }
0x102e   : > { %1708 = vrot.lane.b32.xlu1 %v5649_v55, %s5069_s19 }
0x1032   : > { %1919 = vrot.lane.b32.xlu1 %v5619_v16, %s5068_s18 }
0x1036   : > { %2130 = vrot.lane.b32.xlu1 %v5653_v61, %s5067_s2 }
0x103a   : > { %2341 = vrot.lane.b32.xlu1 %v5681_v29, %s5066_s29 }
0x103e   : > { %2552 = vrot.lane.b32.xlu1 %v5709_v2, %s5065_s28 }
0x1042   : > { %2763 = vrot.lane.b32.xlu1 %v4255_v32, %s5064_s16 }
0x109e   : > { %v2866_v5 = vpop.xlane.xlu1 %2865 }
0x109f   : > { %v2868_v38 = vsub.f32 %v4262_v34, %v2866_v5 }
0x10a0   : > { %v2863_v59 = vpop.xlane.xlu0 %2862 }
0x10a1   : > { %v2871_v39 = vmul.f32 1.442695, %v2868_v38  ;;  %v2867_v40 = vsub.f32 %v2852_v36, %v2863_v59  ;;  %v4584_v59 = vld [vmem:[%s5420_s9 + $0x30] sm:$0xff]  }
0x10a2   : > { %v2884_v55 = vpop.permute.xlu1 %2883  ;;  %4293 = vmatpush3.bf16.msra.mxu0 %v4584_v59 }
0x10a3   : > { %4655 = vpow2.f32 %v2871_v39  ;;  %v2869_v41 = vmul.f32 1.442695, %v2867_v40  ;;  %4294 = vmatprep.subr.bf16.mxu0 %v5061_v53  ;;  %v4585_v39 = vld [vmem:[%s5420_s9 + $0x28] sm:$0xff]   ;;  %v4586_v40 = vld [vmem:[%s5420_s9 + $0x20] sm:$0xff]  }
0x10a5   : > { %4657 = vpow2.f32 %v2869_v41  ;;  %v4588_v41 = vld [vmem:[%s5420_s9 + $0x10] sm:$0xff]  }
0x10a6   : > { %v1707_v16 = vpop.permute.xlu1 %1706  ;;  %4295 = vmatpush3.bf16.msra.mxu0 %v4585_v39 }
0x10a7   : > { %1713 = vst.msk [vmem:[#allocation3] sm:$0xff] %vm1712_vm3, %v1707_v16  ;;  %4296 = vmatprep.subr.bf16.mxu0 %v5061_v53  ;;  %v4589_v16 = vld [vmem:[%s5420_s9 + $0x8] sm:$0xff]  }
0x10aa   : > { %v1709_v61 = vpop.permute.xlu1 %1708  ;;  %4297 = vmatpush3.bf16.msra.mxu0 %v4586_v40 }
0x10ab   : > { %1714 = vst.msk [vmem:[#allocation3 + $0x8] sm:$0xff] %vm1712_vm3, %v1709_v61  ;;  %4298 = vmatprep.subr.bf16.mxu0 %v5061_v53  ;;  %v4590_v61 = vld [vmem:[%s5420_s9] sm:$0xff]  }
0x10ae   : > { %v1920_v29 = vpop.permute.xlu1 %1919 }
0x10af   : > { %1925 = vst.msk [vmem:[#allocation3 + $0x8] sm:$0xff] %vm1923_vm4, %v1920_v29 }
0x10b0   : > { %v4656_v42 = vpop.eup %4655 }
0x10b1   : > { %v2876_v43 = vsel %vm1309_vm2, %v4656_v42, 0.0 }
0x10b2   : > { %v4658_v44 = vpop.eup %4657  ;;  %v2131_v45 = vpop.permute.xlu1 %2130  ;;  %2877 = vadd.xlane.f32.xlu0 %v2876_v43 }
0x10b3   : > { %2136 = vst.msk [vmem:[#allocation3 + $0x8] sm:$0xff] %vm2134_vm5, %v2131_v45  ;;  %v2873_v46 = vsel %vm1309_vm2, %v4658_v44, 0.0 }
0x10b6   : > { %v2342_v47 = vpop.permute.xlu1 %2341  ;;  %2874 = vadd.xlane.f32.xlu0 %v2873_v46 }
0x10b7   : > { %2347 = vst.msk [vmem:[#allocation3 + $0x8] sm:$0xff] %vm2345_vm6, %v2342_v47 }
0x10ba   : > { %v2553_v48 = vpop.permute.xlu1 %2552 }
0x10bb   : > { %2558 = vst.msk [vmem:[#allocation3 + $0x8] sm:$0xff] %vm2556_vm7, %v2553_v48 }
0x10be   : > { %v2764_v49 = vpop.permute.xlu1 %2763 }
0x10bf   : > { %2769 = vst.msk [vmem:[#allocation3 + $0x8] sm:$0xff] %vm2767_vm8, %v2764_v49  ;;  %v3957_v49 = vld [vmem:[%s903_s6] ss:$0 sm:$0xff] }
0x10cc   : > { %2885 = vrot.lane.b32.xlu0 %v5543_v7, %s5069_s19 }
0x10d0   : > { %1917 = vrot.lane.b32.xlu0 %v5621_v17, %s5068_s18 }
0x10d4   : > { %2128 = vrot.lane.b32.xlu0 %v5655_v62, %s5067_s2 }
0x10d8   : > { %2339 = vrot.lane.b32.xlu0 %v5683_v30, %s5066_s29  ;;  %s6077_s29 = sld [smem:[#allocation30_spill]] }
0x10dc   : > { %2550 = vrot.lane.b32.xlu0 %v5711_v3, %s5065_s28  ;;  %v4575_v3 = vld [vmem:[%s5418_s17 + $0x38] sm:$0xff]  }
0x10de   : > { %p3981_p3 = scmp.ne.s32.totalorder %s6077_s29, 1 }
0x10e0   : > { %2761 = vrot.lane.b32.xlu0 %v2750_v33, %s5064_s16 }
0x113b   : > { %v2878_v50 = vpop.xlane.xlu0 %2877 }
0x113c   : > { %4659 = vrcp.f32 %v2878_v50 }
0x113f   : > { %v2875_v51 = vpop.xlane.xlu0 %2874 }
0x1140   : > { %4661 = vrcp.f32 %v2875_v51 }
0x1143   : > { %v2886_v52 = vpop.permute.xlu0 %2885 }
0x1144   : > { %4263 = vmatprep.subr.mxu1 %v2886_v52 }
0x1145   : > { %4264 = vmatpush3.msra.mxu1 %v2886_v52 }
0x1146   : > { %4265 = vmatprep.subr.mxu1 %v2884_v55 }
0x1147   : > { %4266 = vmatpush3.msra.mxu1 %v2884_v55  ;;  %v1918_v7 = vpop.permute.xlu0 %1917  ;;  %v4587_v55 = vld [vmem:[%s5420_s9 + $0x18] sm:$0xff]  }
0x1148   : > { %1924 = vst.msk [vmem:[#allocation3] sm:$0xff] %vm1923_vm4, %v1918_v7  ;;  %4270 = vmatprep.subr.bf16.mxu1 %v5061_v53  ;;  %4299 = vmatpush3.bf16.msra.mxu0 %v4587_v55  ;;  %v3958_v7 = vld [vmem:[%s906_s0] ss:$0 sm:$0xff] }
0x1149   : > { %v4660_v62 = vpop.eup %4659  ;;  %4300 = vmatprep.subr.bf16.mxu0 %v5061_v53 }
0x114a   : > { %v2882_v0 = vmul.f32 %v4660_v62, %v4656_v42 }
0x114b   : > { %v2129_v17 = vpop.permute.xlu0 %2128 }
0x114c   : > { %2135 = vst.msk [vmem:[#allocation3] sm:$0xff] %vm2134_vm5, %v2129_v17  ;;  %4301 = vmatpush3.bf16.msra.mxu0 %v4588_v41 }
0x114d   : > { %v4662_v30 = vpop.eup %4661  ;;  %4302 = vmatprep.subr.bf16.mxu0 %v5061_v53 }
0x114e   : > { %v2881_v54 = vmul.f32 %v4662_v30, %v4658_v44 }
0x114f   : > { %v2340_v63 = vpop.permute.xlu0 %2339 }
0x1150   : > { %2346 = vst.msk [vmem:[#allocation3] sm:$0xff] %vm2345_vm6, %v2340_v63  ;;  %4267 = vmatprep.mubr.msk.f32.mxu1 %vm1309_vm2, %v2881_v54  ;;  %4303 = vmatpush3.bf16.msra.mxu0 %v4589_v16  ;;  %v4591_v63 = vld [vmem:[%s5426_s25 + $0x38] sm:$0xff]  }
0x1151   : > { %4268 = vmatmul.mubr.msk.f32.vlgmr.msra.gmra.mxu1 %vm1309_vm2, %v2882_v0  ;;  %4304 = vmatprep.subr.bf16.mxu0 %v5061_v53  ;;  %v4592_v0 = vld [vmem:[%s5426_s25 + $0x30] sm:$0xff]  }
0x1152   : > { %4286 = vmatprep.mubr.msk.bf16.mxu1 %vm5062_vm1, %v5061_v53  ;;  %4271 = vmatpush3.bf16.msra.mxu1 %v4575_v3  ;;  %v4595_v3 = vld [vmem:[%s5426_s25 + $0x18] sm:$0xff]  }
0x1153   : > { %v2551_v1 = vpop.permute.xlu0 %2550  ;;  %4272 = vmatprep.subr.bf16.mxu1 %v5061_v53 }
0x1154   : > { %2557 = vst.msk [vmem:[#allocation3] sm:$0xff] %vm2556_vm7, %v2551_v1  ;;  %4305 = vmatpush3.bf16.msra.mxu0 %v4590_v61  ;;  %v4593_v1 = vld [vmem:[%s5426_s25 + $0x28] sm:$0xff]  }
0x1156   : > { %4273 = vmatpush3.bf16.msra.mxu1 %v4576_v4  ;;  %v4596_v4 = vld [vmem:[%s5426_s25 + $0x10] sm:$0xff]  }
0x1157   : > { %v2762_v2 = vpop.permute.xlu0 %2761  ;;  %4274 = vmatprep.subr.bf16.mxu1 %v5061_v53 }
0x1158   : > { %2768 = vst.msk [vmem:[#allocation3] sm:$0xff] %vm2767_vm8, %v2762_v2  ;;  %v4594_v2 = vld [vmem:[%s5426_s25 + $0x20] sm:$0xff]  }
0x115a   : > { %4275 = vmatpush3.bf16.msra.mxu1 %v4577_v6  ;;  %v4597_v6 = vld [vmem:[%s5426_s25 + $0x8] sm:$0xff]  }
0x115b   : > { %4276 = vmatprep.subr.bf16.mxu1 %v5061_v53 }
0x115e   : > { %4277 = vmatpush3.bf16.msra.mxu1 %v4578_v8  ;;  %v4598_v8 = vld [vmem:[%s5426_s25] sm:$0xff]  }
0x115f   : > { %4278 = vmatprep.subr.bf16.mxu1 %v5061_v53 }
0x1162   : > { %4279 = vmatpush3.bf16.msra.mxu1 %v4579_v9  ;;  %v3959_v9 = vld [vmem:[%s909_s1] ss:$0 sm:$0xff] }
0x1163   : > { %4280 = vmatprep.subr.bf16.mxu1 %v5061_v53 }
0x1166   : > { %4281 = vmatpush3.bf16.msra.mxu1 %v4580_v10 }
0x1167   : > { %4282 = vmatprep.subr.bf16.mxu1 %v5061_v53 }
0x116a   : > { %4283 = vmatpush3.bf16.msra.mxu1 %v4581_v11 }
0x116b   : > { %4284 = vmatprep.subr.bf16.mxu1 %v5061_v53 }
0x116e   : > { %4285 = vmatpush3.bf16.msra.mxu1 %v4582_v12 }
0x116f   : > { %4310 = vmatprep.subr.bf16.mxu1 %v5061_v53 }
0x1211   : > { %v4269_v13 = vpop.f32.mrf.mxu1 }
0x1212   : > { %2974 = vrot.lane.b32.xlu1 %v4269_v13, %s5063_s12 }
0x1213   : > { %v2961_v14 = vpop.f32.mrf.mxu1 }
0x1214   : > { %2972 = vrot.lane.b32.xlu0 %v2961_v14, %s5063_s12 }
0x1284   : > { %v2975_v15 = vpop.permute.xlu1 %2974 }
0x1285   : > { %2980 = vst.msk [vmem:[#allocation3 + $0x8] sm:$0xff] %vm2978_vm9, %v2975_v15 }
0x1286   : > { %v2973_v18 = vpop.permute.xlu0 %2972 }
0x1287   : > { %2979 = vst.msk [vmem:[#allocation3] sm:$0xff] %vm2978_vm9, %v2973_v18 }
0x128c   : > { %v2982_v20 = vld [vmem:[#allocation3 + $0x8] sm:$0xff] }
0x128e   : > { %v2981_v19 = vld [vmem:[#allocation3] sm:$0xff] }
0x128f   : > { %v2983_v60 = vpack.c.bf16 %v2982_v20, %v2981_v19 }
0x1291   : > { %4287 = vmatmul.mubr.bf16.vlgmr.msra.gmra.mxu1 %v2983_v60 }
0x1292   : > { %4326 = vmatprep.mubr.msk.bf16.mxu1 %vm5062_vm1, %v5061_v53  ;;  %4311 = vmatpush3.bf16.msra.mxu1 %v4591_v63 }
0x1293   : > { %4312 = vmatprep.subr.bf16.mxu1 %v5061_v53 }
0x1296   : > { %4313 = vmatpush3.bf16.msra.mxu1 %v4592_v0 }
0x1297   : > { %4314 = vmatprep.subr.bf16.mxu1 %v5061_v53 }
0x129a   : > { %4315 = vmatpush3.bf16.msra.mxu1 %v4593_v1 }
0x129b   : > { %4316 = vmatprep.subr.bf16.mxu1 %v5061_v53 }
0x129e   : > { %4317 = vmatpush3.bf16.msra.mxu1 %v4594_v2 }
0x129f   : > { %4318 = vmatprep.subr.bf16.mxu1 %v5061_v53 }
0x12a2   : > { %4319 = vmatpush3.bf16.msra.mxu1 %v4595_v3 }
0x12a3   : > { %4320 = vmatprep.subr.bf16.mxu1 %v5061_v53 }
0x12a6   : > { %4321 = vmatpush3.bf16.msra.mxu1 %v4596_v4 }
0x12a7   : > { %4322 = vmatprep.subr.bf16.mxu1 %v5061_v53 }
0x12aa   : > { %4323 = vmatpush3.bf16.msra.mxu1 %v4597_v6 }
0x12ab   : > { %4324 = vmatprep.subr.bf16.mxu1 %v5061_v53 }
0x12ae   : > { %4325 = vmatpush3.bf16.msra.mxu1 %v4598_v8 }
0x1351   : > { %v3089_v58 = vpop.f32.mrf.mxu1 }
0x1352   : > { %v3090_v21 = vadd.f32 %v3948_v57, %v3089_v58 }
0x1353   : > { %v4288_v22 = vpop.f32.mrf.mxu1 }
0x1354   : > { %v3096_v24 = vadd.f32 %v4679_v23, %v3090_v21 }
0x1355   : > { %v3092_v25 = vpop.f32.mrf.mxu1 }
0x1356   : > { %v3093_v26 = vadd.f32 %v3948_v57, %v3092_v25  ;;  %3100 = vadd.xlane.f32.xlu0 %v3096_v24  ;;  %v3970_v25 = vld [vmem:[%s912_s23] ss:$0 sm:$0xff] }
0x1357   : > { %v4289_v27 = vpop.f32.mrf.mxu1 }
0x1358   : > { %v3097_v28 = vadd.f32 %v4680_v56, %v3093_v26 }
0x135a   : > { %3102 = vadd.xlane.f32.xlu1 %v3097_v28 }
0x13df   : > { %v3101_v32 = vpop.xlane.xlu0 %3100 }
0x13e0   : > { %v3105_v33 = vmul.f32 0.0078125, %v3101_v32 }
0x13e2   : > { %v3107_v34 = vsub.f32 %v3096_v24, %v3105_v33 }
0x13e3   : > { %v3103_v35 = vpop.xlane.xlu1 %3102 }
0x13e4   : > { %v3106_v36 = vmul.f32 0.0078125, %v3103_v35  ;;  %v3109_v37 = vmul.f32 %v3107_v34, %v3107_v34 }
0x13e6   : > { %v3108_v5 = vsub.f32 %v3097_v28, %v3106_v36  ;;  %3111 = vadd.xlane.f32.xlu0 %v3109_v37 }
0x13e8   : > { %v3110_v38 = vmul.f32 %v3108_v5, %v3108_v5 }
0x13ea   : > { %3113 = vadd.xlane.f32.xlu0 %v3110_v38 }
0x146f   : > { %v3112_v29 = vpop.xlane.xlu0 %3111 }
0x1470   : > { %v3115_v42 = vmul.f32 0.0078125, %v3112_v29 }
0x1472   : > { %v3117_v43 = vadd.f32 1e-05, %v3115_v42 }
0x1473   : > { %v3114_v44 = vpop.xlane.xlu0 %3113 }
0x1474   : > { %4663 = vrsqrt.f32 %v3117_v43  ;;  %v3116_v45 = vmul.f32 0.0078125, %v3114_v44  ;;  %v3979_v44 = vld [vmem:[%s915_s30] ss:$0 sm:$0xff] }
0x1476   : > { %v3118_v46 = vadd.f32 1e-05, %v3116_v45 }
0x1478   : > { %4665 = vrsqrt.f32 %v3118_v46  ;;  %v3980_v46 = vld [vmem:[%s918_s4] ss:$0 sm:$0xff]  ;;  %s6078_s4 = sld [smem:[#allocation58_spill]] (!%p3981_p3) }
0x1481   : > { %v4664_v47 = vpop.eup %4663 }
0x1482   : > { %v3121_v48 = vmul.f32 %v4664_v47, %v3107_v34 }
0x1484   : > { %v3129_v52 = vmul.f32 %v3957_v49, %v3121_v48 }
0x1485   : > { %v4666_v50 = vpop.eup %4665 }
0x1486   : > { %v3122_v51 = vmul.f32 %v4666_v50, %v3108_v5  ;;  %v3137_v62 = vadd.f32 %v3958_v7, %v3129_v52 }
0x1488   : > { %v3130_v17 = vmul.f32 %v3957_v49, %v3122_v51 }
0x148a   : > { %v3138_v30 = vadd.f32 %v3958_v7, %v3130_v17 }
0x148c   : > { %v3139_v54 = vpack.c.bf16 %v3138_v30, %v3137_v62 }
0x148e   : > { %4307 = vmatmul.mubr.bf16.vlgmr.msra.gmra.mxu0 %v3139_v54 }
0x154e   : > { %v3245_v10 = vpop.f32.mrf.mxu0 }
0x154f   : > { %v3246_v11 = vadd.f32 %v3959_v9, %v3245_v10 }
0x1550   : > { %v4308_v12 = vpop.f32.mrf.mxu0 }
0x1551   : > { %v3968_v13 = vmul.f32 -1.442695, %v3246_v11 }
0x1552   : > { %v3248_v14 = vpop.f32.mrf.mxu0 }
0x1553   : > { %4667 = vpow2.f32 %v3968_v13  ;;  %v3249_v15 = vadd.f32 %v3959_v9, %v3248_v14 }
0x1554   : > { %v4309_v18 = vpop.f32.mrf.mxu0 }
0x1555   : > { %v3969_v19 = vmul.f32 -1.442695, %v3249_v15 }
0x1557   : > { %4669 = vpow2.f32 %v3969_v19 }
0x1560   : > { %v4668_v20 = vpop.eup %4667 }
0x1561   : > { %v3258_v53 = vadd.f32 1.0, %v4668_v20 }
0x1563   : > { %4671 = vrcp.f32 %v3258_v53 }
0x1564   : > { %v4670_v60 = vpop.eup %4669 }
0x1565   : > { %v3259_v57 = vadd.f32 1.0, %v4670_v60 }
0x1567   : > { %4673 = vrcp.f32 %v3259_v57 }
0x1570   : > { %v4672_v58 = vpop.eup %4671 }
0x1571   : > { %v3264_v22 = vmul.f32 %v4672_v58, %v3246_v11 }
0x1574   : > { %v4674_v21 = vpop.eup %4673 }
0x1575   : > { %v3265_v23 = vmul.f32 %v4674_v21, %v3249_v15 }
0x1577   : > { %v3266_v24 = vpack.c.bf16 %v3265_v23, %v3264_v22 }
0x1579   : > { %4327 = vmatmul.mubr.bf16.vlgmr.msra.gmra.mxu1 %v3266_v24 }
0x1639   : > { %v3372_v26 = vpop.f32.mrf.mxu1 }
0x163a   : > { %v3373_v27 = vadd.f32 %v3970_v25, %v3372_v26 }
0x163b   : > { %v4328_v56 = vpop.f32.mrf.mxu1 }
0x163c   : > { %v3379_v28 = vadd.f32 %v3373_v27, %v3137_v62 }
0x163d   : > { %v3375_v31 = vpop.f32.mrf.mxu1 }
0x163e   : > { %v3376_v32 = vadd.f32 %v3970_v25, %v3375_v31  ;;  %3383 = vadd.xlane.f32.xlu0 %v3379_v28 }
0x163f   : > { %v4329_v33 = vpop.f32.mrf.mxu1 }
0x1640   : > { %v3380_v34 = vadd.f32 %v3376_v32, %v3138_v30 }
0x1642   : > { %3385 = vadd.xlane.f32.xlu1 %v3380_v34 }
0x16c7   : > { %v3384_v35 = vpop.xlane.xlu0 %3383 }
0x16c8   : > { %v3387_v36 = vmul.f32 0.0078125, %v3384_v35 }
0x16ca   : > { %v3389_v37 = vsub.f32 %v3379_v28, %v3387_v36 }
0x16cb   : > { %v3386_v5 = vpop.xlane.xlu1 %3385 }
0x16cc   : > { %v3388_v38 = vmul.f32 0.0078125, %v3386_v5  ;;  %v3391_v59 = vmul.f32 %v3389_v37, %v3389_v37 }
0x16ce   : > { %v3390_v39 = vsub.f32 %v3380_v34, %v3388_v38  ;;  %3393 = vadd.xlane.f32.xlu0 %v3391_v59 }
0x16d0   : > { %v3392_v40 = vmul.f32 %v3390_v39, %v3390_v39 }
0x16d2   : > { %3395 = vadd.xlane.f32.xlu1 %v3392_v40 }
0x1757   : > { %v3394_v55 = vpop.xlane.xlu0 %3393 }
0x1758   : > { %v3397_v41 = vmul.f32 0.0078125, %v3394_v55 }
0x175a   : > { %v3399_v16 = vadd.f32 1e-05, %v3397_v41 }
0x175b   : > { %v3396_v61 = vpop.xlane.xlu1 %3395 }
0x175c   : > { %4675 = vrsqrt.f32 %v3399_v16  ;;  %v3398_v29 = vmul.f32 0.0078125, %v3396_v61 }
0x175e   : > { %v3400_v42 = vadd.f32 1e-05, %v3398_v29 }
0x1760   : > { %4677 = vrsqrt.f32 %v3400_v42 }
0x1769   : > { %v4676_v43 = vpop.eup %4675 }
0x176a   : > { %v3403_v45 = vmul.f32 %v4676_v43, %v3389_v37 }
0x176c   : > { %v3411_v47 = vmul.f32 %v3979_v44, %v3403_v45 }
0x176d   : > { %v4678_v48 = vpop.eup %4677 }
0x176e   : > { %v3419_v49 = vadd.f32 %v3980_v46, %v3411_v47  ;;  %v3404_v50 = vmul.f32 %v4678_v48, %v3390_v39 }
0x1770   : > { %3421 = vst [vmem:[#allocation2] sm:$0xff] %v3419_v49  ;;  %v3412_v51 = vmul.f32 %v3979_v44, %v3404_v50  ;;  %3426 = sbr.rel (%p3981_p3) target bundleno = 6240 (0x1860), region = 132 }
0x1772   : > { %v3420_v52 = vadd.f32 %v3980_v46, %v3412_v51 }
0x1774   : > { %3422 = vst [vmem:[#allocation2 + $0x8] sm:$0xff] %v3420_v52 }
0x1775   : > { %v4681_v7 = vld [vmem:[#allocation16 + $0x38] sm:$0xff]   ;;  %v5070_v17 = vmov 0.0   ;;  %v4682_v62 = vld [vmem:[#allocation16 + $0x30] sm:$0xff]   ;;  %vm5071_vm10 = vmmov 0   ;;  %v4683_v30 = vld [vmem:[#allocation16 + $0x28] sm:$0xff]   ;;  %v3427_v3 = vpack.c.bf16 %v3420_v52, %v3419_v49 }
0x1776   : > { %4330 = vmatprep.subr.bf16.mxu0 %v5070_v17  ;;  %4346 = vmatprep.mubr.msk.bf16.mxu0 %vm5071_vm10, %v5070_v17  ;;  %v4684_v54 = vld [vmem:[#allocation16 + $0x20] sm:$0xff]   ;;  %v4685_v63 = vld [vmem:[#allocation16 + $0x18] sm:$0xff]   ;;  %v4686_v0 = vld [vmem:[#allocation16 + $0x10] sm:$0xff]  }
0x1777   : > { %4331 = vmatpush3.bf16.msra.mxu0 %v4681_v7  ;;  %v4687_v1 = vld [vmem:[#allocation16 + $0x8] sm:$0xff]   ;;  %v4688_v2 = vld [vmem:[#allocation16] sm:$0xff]   ;;  %v3541_v13 = vld [vmem:[%s5443_s14 + $0x8] sm:$0xff] }
0x1778   : > { %4332 = vmatprep.subr.bf16.mxu0 %v5070_v17  ;;  %v3982_v4 = vld [vmem:[%s6078_s4] ss:$0 sm:$0xff] }
0x1779   : > { %v3540_v8 = vld [vmem:[%s5443_s14] sm:$0xff] }
0x177b   : > { %4333 = vmatpush3.bf16.msra.mxu0 %v4682_v62 }
0x177c   : > { %4334 = vmatprep.subr.bf16.mxu0 %v5070_v17 }
0x177f   : > { %4335 = vmatpush3.bf16.msra.mxu0 %v4683_v30 }
0x1780   : > { %4336 = vmatprep.subr.bf16.mxu0 %v5070_v17 }
0x1783   : > { %4337 = vmatpush3.bf16.msra.mxu0 %v4684_v54 }
0x1784   : > { %4338 = vmatprep.subr.bf16.mxu0 %v5070_v17 }
0x1787   : > { %4339 = vmatpush3.bf16.msra.mxu0 %v4685_v63 }
0x1788   : > { %4340 = vmatprep.subr.bf16.mxu0 %v5070_v17 }
0x178b   : > { %4341 = vmatpush3.bf16.msra.mxu0 %v4686_v0 }
0x178c   : > { %4342 = vmatprep.subr.bf16.mxu0 %v5070_v17 }
0x178f   : > { %4343 = vmatpush3.bf16.msra.mxu0 %v4687_v1 }
0x1790   : > { %4344 = vmatprep.subr.bf16.mxu0 %v5070_v17 }
0x1793   : > { %4345 = vmatpush3.bf16.msra.mxu0 %v4688_v2 }
0x1796   : > { %4347 = vmatmul.mubr.bf16.vlgmr.msra.gmra.mxu0 %v3427_v3 }
0x1856   : > { %v3533_v6 = vpop.f32.mrf.mxu0 }
0x1857   : > { %v3534_v9 = vadd.f32 %v3982_v4, %v3533_v6 }
0x1858   : > { %v4348_v10 = vpop.f32.mrf.mxu0 }
0x1859   : > { %v3542_v11 = vadd.f32 %v3540_v8, %v3534_v9 }
0x185a   : > { %v3536_v12 = vpop.f32.mrf.mxu0 }
0x185b   : > { %3544 = vst [vmem:[%s5476_s7] sm:$0xff] %v3542_v11  ;;  %v3537_v14 = vadd.f32 %v3982_v4, %v3536_v12 }
0x185c   : > { %v4349_v15 = vpop.f32.mrf.mxu0 }
0x185d   : > { %v3543_v18 = vadd.f32 %v3541_v13, %v3537_v14 }
0x185f   : > { %3545 = vst [vmem:[%s5476_s7 + $0x8] sm:$0xff] %v3543_v18 }
0x1860 PF: > { %s6079_s2 = sld [smem:[#allocation31_spill]]  ;;  %s3560_s13 = sshll.u32 %s5476_s7, 4  ;;  %s5885_s13 = int_to_ptr.vmem [resolvable:$true] %s3560_s13 }
0x1861   : > { %s6080_s18 = sld [smem:[#allocation26_spill]]  ;;  %s4905_s9 = scalar_lea.vmem %s5885_s13, 256 }
0x1862   : > { %s6081_s19 = sld [smem:[#allocation35_spill]]  ;;  %p4906_p7 = scmp.ne.s32.totalorder %s5885_s13, %s4905_s9 }
0x1863   : > { %s6082_s5 = sld [smem:[#allocation59_spill]]  ;;  %s5072_s27 = smov [#allocation18]  }
0x1864   : > { %s4909_s24 = sshll.u32 %s5072_s27, 4  ;;  %s4910_s24 = int_to_ptr.vmem [resolvable:$false] %s4909_s24 }
0x1865   : > { %s4911_s6 = scalar_lea.vmem %s4910_s24, 512  ;;  %p4912_p5 = scmp.lt.s32.totalorder %s5885_s13, %s4910_s24 }
0x1866   : > { %s3999_s17 = sshll.u32 %s6079_s2, 8  ;;  %p4913_p13 = scmp.lt.s32.totalorder %s4911_s6, %s4905_s9 }
0x1867   : > { %s6083_s14 = sand.u32 1, %s6080_s18  }
0x1868   : > { %s5889_s3 = scalar_lea.sflag [#allocation6], %s6083_s14  ;;  %p6084_p11 = scmp.ne.s32.totalorder %s6081_s19, 0 }
0x1869   : > { %s5882_s10 = scalar_lea.hbm %s6082_s5, %s3999_s17  ;;  %p4914_p4 = por %p4913_p13, %p4912_p5 }
0x186a   : > { %p4907_p0 = pnand %p4906_p7, %p6084_p11 }
0x186c   : > { %p4908_p1 = pneg %p4907_p0 }
0x186e   : > { %p4915_p9 = pnand %p4914_p4, %p4908_p1 }
0x1870   : > { %4918 = shalt.err (!%p4915_p9)
}
0x1871   : > { %s4919_s7 = scalar_lea.hbm %s5882_s10, 256  ;;  %s4923_s25 = scalar_lea.hbm %s6082_s5, 512 }
0x1872   : > { %p4920_p6 = scmp.ne.s32.totalorder %s5882_s10, %s4919_s7  ;;  %p4924_p12 = scmp.lt.s32.totalorder %s5882_s10, %s6082_s5 }
0x1873   : > { %p4925_p2 = scmp.lt.s32.totalorder %s4923_s25, %s4919_s7 }
0x1874   : > { %p4921_p8 = pnand %p4920_p6, %p6084_p11 }
0x1875   : > { %p4926_p3 = por %p4925_p2, %p4924_p12 }
0x1876   : > { %p4922_p10 = pneg %p4921_p8 }
0x1878   : > { %p4927_p7 = pnand %p4926_p3, %p4922_p10 }
0x187a   : > { %4930 = shalt.err (!%p4927_p7)
}
0x187b   : > { %s5073_s23 = smov 128   ;;  %s5074_s11 = smov 8  }
0x187c   : > { %4377 = dma.vmem_to_hbm [thread:$0]  (%p6084_p11), %s5885_s13, 256, %s5882_s10, %s5889_s3, %s5073_s23, %s5073_s23, %s5074_s11  }
0x187d PF: > { %s6085_s21 = sld [smem:[#allocation34_spill]] }
0x187e   : > { %s6086_s12 = sld [smem:[#allocation25_spill]] }
0x187f   : > { %s6087_s16 = sld [smem:[#allocation36_spill]] }
0x1883   : > { %p4418_p0 = scmp.ge.s32.totalorder %s6085_s21, 2 }
0x1884   : > { %s3575_s28 = sand.u32 1, %s6086_s12  }
0x1885   : > { %p6088_p1 = scmp.ne.s32.totalorder %s6087_s16, 0  ;;  %s3576_s29 = scalar_lea.sflag [#allocation6], %s3575_s28 }
0x1887   : > { %p4406_p5 = pnand %p4418_p0, %p6088_p1 }
0x1889   : > { %p4407_p13 = pneg %p4406_p5 }
0x188b   : > { %4996 = dma.done.wait (%p4407_p13), %s3576_s29, 256  }
0x188c   : > { %4998 = vsyncadd (%p4407_p13), %s3576_s29, 4294967040  ;;  %s40_s2 = sadd.s32 1, %s6085_s21   ;;  %s6089_s27 = sld [smem:[#allocation26_spill]] }
0x188d   : > { %p37_p4 = scmp.ge.s32.totalorder %s40_s2, 6   ;;  %s6090_s28 = sld [smem:[#allocation27_spill]] }
0x188e   : > { %s6091_s29 = sld [smem:[#allocation40_spill]] }
0x188f   : > { %s6092_s30 = sld [smem:[#allocation28_spill]] }
0x1890   : > { %s6093_s0 = sld [smem:[#allocation29_spill]] }
0x1891   : > { %s6094_s19 = sld [smem:[#allocation39_spill]]  ;;  %39 = sbr.rel (!%p37_p4) target bundleno = 34 (0x22), region = 224 }
0x1892   : > { %s6095_s1 = sld [smem:[#allocation32_spill]] }
0x1893   : > { %s6096_s20 = sld [smem:[#allocation33_spill]] }
0x1894   : > { %s6097_s21 = sld [smem:[#allocation37_spill]] }
0x1895   : > { %s6098_s22 = sld [smem:[#allocation38_spill]] }
0x1896   :  { %3581 = vsyncpa [#allocation5], 1 }
0x1897   :  { %3583 = vsyncpa [#allocation5 + $0x1], 1 }
0x1898   :  { %3584 = vsyncpa [#allocation8], 1 }
0x1899   :  { %3585 = vsyncpa [#allocation11], 1 }
0x189a   :  { %3587 = vsyncpa [#allocation11 + $0x1], 1 }
0x189b   :  { %3588 = vsyncpa [#allocation14], 1 }
0x189c   :  { %3590 = vsyncpa [#allocation14 + $0x1], 1 }
0x189d   :  { %3591 = vsyncpa [#allocation17], 1 }
0x189e   :  { %3592 = vsyncpa [#allocation6], 1 }
0x189f   :  { %3594 = vsyncpa [#allocation6 + $0x1], 1 }

</bundles_post_ra>
